<compile_context>
chip_gen: v6e
topology: v6e:2x2x1
jax: 0.10.0
libtpu: 0.0.40
codegen_flags: <defaults>
</compile_context>

<pallas_src>
import jax
import jax.numpy as jnp
from jax import lax
from jax.experimental import pallas as pl
from jax.experimental.pallas import tpu as pltpu

# ----------------------------- model sizes ----------------------------------
B = 2          # batch
T = 8          # sequence length
N_CLASS = 16   # input size == output size (vocab)
N_HIDDEN = 32  # LSTM hidden size
B_PAD = 8      # batch padded to one sublane tile (8) for aligned slices / full vregs

# --------------------- packed-slab row layout (all multiples of 8) ------------
TB = T * B_PAD                          # 64 time-major padded rows of x
LANES = 8 * N_HIDDEN                    # 256 lanes (both directions x 4 gates)
ROW_X = 0                               # x2d: rows 0:64,  lanes 0:16
ROW_WIH = TB                            # 64:  wih_f|wih_b (16, 256)
ROW_WHH = ROW_WIH + N_CLASS             # 80:  whh_f|whh_b (32, 256)  (bwd half unused)
ROW_BIAS = ROW_WHH + N_HIDDEN           # 112: (b_ih+b_hh) both dirs (1, 256)
ROW_WOUT = 120                          # 120: w_out (64, 16) in lanes 0:16
ROW_BOUT = ROW_WOUT + 2 * N_HIDDEN      # 184: b_out (1, 16)  in lanes 0:16
ROWS = 192                              # padded to a sublane-tile multiple

HIGHEST = lax.Precision.HIGHEST


# ------------------------------ Pallas kernel --------------------------------
def bilstm_kernel(slab_ref,   # (ROWS, 256) packed: x | wih | whh | bias | w_out | b_out
                  out_ref):   # (Bp, n_class)
    H, H4, H8 = N_HIDDEN, 4 * N_HIDDEN, 8 * N_HIDDEN
    Bp, C = B_PAD, N_CLASS

    # ---- unpack the single packed VMEM slab (static, sublane-aligned slices) ----
    x = slab_ref[ROW_X:ROW_X + TB, 0:C]                       # (T*Bp, C)  time-major
    wih = slab_ref[ROW_WIH:ROW_WIH + C, :]                    # (C, 8H)    both directions
    whh_f = slab_ref[ROW_WHH:ROW_WHH + H, 0:H4]               # (H, 4H)    forward recurrence
    bias = slab_ref[ROW_BIAS:ROW_BIAS + 1, :]                 # (1, 8H)    b_ih + b_hh folded
    w_out_f = slab_ref[ROW_WOUT:ROW_WOUT + H, 0:C]            # (H, C)
    w_out_b = slab_ref[ROW_WOUT + H:ROW_WOUT + 2 * H, 0:C]    # (H, C)
    b_out = slab_ref[ROW_BOUT:ROW_BOUT + 1, 0:C]              # (1, C)

    # ---- pre-batched input projection for BOTH directions, bias folded in ----
    # One (T*Bp, C) @ (C, 8H) MXU op; result (64, 256) = 16 vregs kept in registers
    # (no VMEM scratch round-trip).
    zx = jnp.dot(x, wih, preferred_element_type=jnp.float32, precision=HIGHEST) + bias

    # Per-lane scale folding sigmoid into a single tanh:
    #   sigmoid(v) = 0.5 * (tanh(0.5 * v) + 1)
    # PyTorch gate order i, f, g, o -> scale 0.5 everywhere except the g lanes.
    lane = lax.broadcasted_iota(jnp.int32, (Bp, H4), 1)
    g_lane = (lane >= 2 * H) & (lane < 3 * H)
    gate_scale = jnp.where(g_lane, jnp.float32(1.0), jnp.float32(0.5))   # hoisted constant

    def gates(z):
        # ONE EUP push for all four gates: tanh over the full (Bp, 4H) vreg, then the
        # sigmoid lanes are finished with the cheap VPU affine 0.5*(t+1).
        th = jnp.tanh(z * gate_scale)
        i = 0.5 * th[:, 0 * H:1 * H] + 0.5
        f = 0.5 * th[:, 1 * H:2 * H] + 0.5
        g = th[:, 2 * H:3 * H]
        o = 0.5 * th[:, 3 * H:4 * H] + 0.5
        return i, f, g, o

    # ---- forward direction: 8 fully-unrolled dependent steps, static slices of zx ----
    h = jnp.zeros((Bp, H), jnp.float32)
    c = jnp.zeros((Bp, H), jnp.float32)
    for t_step in range(T):
        zx_t = zx[t_step * Bp:(t_step + 1) * Bp, 0:H4]         # (Bp, 4H) fwd half
        z = zx_t + jnp.dot(h, whh_f, preferred_element_type=jnp.float32,
                           precision=HIGHEST)
        i, f, g, o = gates(z)
        c = f * c + i * g
        h = o * jnp.tanh(c)

    # ---- backward direction: outputs[:, -1, H:2H] is the bwd LSTM's hidden after ONE
    # step (zero initial state, input x[T-1]); the h@whh_b term vanishes. ----
    z_b = zx[(T - 1) * Bp:T * Bp, H4:H8]                       # (Bp, 4H) bwd half
    ib, _, gb, ob = gates(z_b)
    h_bwd = ob * jnp.tanh(ib * gb)                             # c0 == 0 => c = i*g

    # ---- head: split matmul avoids the lane-concat of two (Bp, H) halves ----
    # TODO(synk): out is (8,16) -> 16-lane masked vst; widen toward 128 lanes only if
    # this head ever sits on a hot path (negligible at this size).
    out_ref[...] = (
        jnp.dot(h, w_out_f, preferred_element_type=jnp.float32, precision=HIGHEST)
        + jnp.dot(h_bwd, w_out_b, preferred_element_type=jnp.float32, precision=HIGHEST)
        + b_out)


# ------------------------------- wrapper -------------------------------------
def pack_inputs(x_btc, p):
    """Pack x and all 8 parameter tensors into ONE VMEM slab (single input DMA)."""
    Bn, Tn, C = x_btc.shape
    # Pad batch to a full sublane tile, flatten to time-major 2D (T*Bp, C).
    x_tbc = jnp.transpose(x_btc, (1, 0, 2)).astype(jnp.float32)        # (T, B, C)
    x_pad = jnp.zeros((Tn, B_PAD, C), jnp.float32).at[:, :Bn, :].set(x_tbc)
    x2d = x_pad.reshape(Tn * B_PAD, C)

    wih_cat = jnp.concatenate([p["wih_f"], p["wih_b"]], axis=1)        # (C, 8H)
    whh_cat = jnp.concatenate([p["whh_f"], p["whh_b"]], axis=1)        # (H, 8H)
    bias_cat = jnp.concatenate([p["b_f"], p["b_b"]], axis=1)           # (1, 8H)

    slab = jnp.zeros((ROWS, LANES), jnp.float32)
    slab = slab.at[ROW_X:ROW_X + Tn * B_PAD, :C].set(x2d)
    slab = slab.at[ROW_WIH:ROW_WIH + C, :].set(wih_cat)
    slab = slab.at[ROW_WHH:ROW_WHH + N_HIDDEN, :].set(whh_cat)
    slab = slab.at[ROW_BIAS:ROW_BIAS + 1, :].set(bias_cat)
    slab = slab.at[ROW_WOUT:ROW_WOUT + 2 * N_HIDDEN, :N_CLASS].set(p["w_out"])
    slab = slab.at[ROW_BOUT:ROW_BOUT + 1, :N_CLASS].set(p["b_out"])
    return slab


def bilstm_forward(x_btc, params):
    """x_btc: (B, T, n_class) float32 (PyTorch batch_first layout)."""
    Bn = x_btc.shape[0]
    slab = pack_inputs(x_btc, params)

    vmem = pl.BlockSpec(memory_space=pltpu.MemorySpace.VMEM)
    out = pl.pallas_call(
        bilstm_kernel,
        out_shape=jax.ShapeDtypeStruct((B_PAD, N_CLASS), jnp.float32),
        in_specs=[vmem],
        out_specs=vmem,
    )(slab)
    return out[:Bn]


# --------------------------- parameter init -----------------------------------
def init_params(key):
    """PyTorch-style U(-1/sqrt(H), 1/sqrt(H)) init.

    Weights are stored pre-transposed ((in, out)); the two PyTorch biases per
    direction (b_ih + b_hh) are each drawn independently and summed (matching the
    distribution of a folded checkpoint bias).
    """
    k = 1.0 / jnp.sqrt(jnp.float32(N_HIDDEN))
    keys = jax.random.split(key, 10)

    def u(kk, shape):
        return jax.random.uniform(kk, shape, jnp.float32, minval=-k, maxval=k)

    return {
        "wih_f": u(keys[0], (N_CLASS, 4 * N_HIDDEN)),
        "whh_f": u(keys[1], (N_HIDDEN, 4 * N_HIDDEN)),
        "b_f":   u(keys[2], (1, 4 * N_HIDDEN)) + u(keys[3], (1, 4 * N_HIDDEN)),
        "wih_b": u(keys[4], (N_CLASS, 4 * N_HIDDEN)),
        "whh_b": u(keys[5], (N_HIDDEN, 4 * N_HIDDEN)),
        "b_b":   u(keys[6], (1, 4 * N_HIDDEN)) + u(keys[7], (1, 4 * N_HIDDEN)),
        "w_out": u(keys[8], (2 * N_HIDDEN, N_CLASS)),
        "b_out": u(keys[9], (1, N_CLASS)),
    }


# --------------------------- pure-JAX reference --------------------------------
def bilstm_reference(x_btc, p):
    H = N_HIDDEN

    def cell(x_t, h, c, wih, whh, b):
        z = (jnp.dot(x_t, wih, precision=HIGHEST)
             + jnp.dot(h, whh, precision=HIGHEST) + b)
        i = jax.nn.sigmoid(z[:, 0 * H:1 * H])
        f = jax.nn.sigmoid(z[:, 1 * H:2 * H])
        g = jnp.tanh(z[:, 2 * H:3 * H])
        o = jax.nn.sigmoid(z[:, 3 * H:4 * H])
        c = f * c + i * g
        h = o * jnp.tanh(c)
        return h, c

    h = jnp.zeros((x_btc.shape[0], H), jnp.float32)
    c = jnp.zeros_like(h)
    for t in range(x_btc.shape[1]):
        h, c = cell(x_btc[:, t], h, c, p["wih_f"], p["whh_f"], p["b_f"])
    hb, _ = cell(x_btc[:, -1], jnp.zeros_like(h), jnp.zeros_like(h),
                 p["wih_b"], p["whh_b"], p["b_b"])
    hh = jnp.concatenate([h, hb], axis=-1)
    return jnp.dot(hh, p["w_out"], precision=HIGHEST) + p["b_out"]


# ----------------------------------- main --------------------------------------
if __name__ == "__main__":
    key = jax.random.PRNGKey(0)
    k_x, k_p = jax.random.split(key)
    X = jax.random.normal(k_x, (B, T, N_CLASS), jnp.float32)   # (batch, seq, n_class)
    params = init_params(k_p)

    out = bilstm_forward(X, params)
    out = jax.block_until_ready(out)

    ref = bilstm_reference(X, params)
    assert out.shape == (B, N_CLASS)
    assert jnp.allclose(out, ref, atol=1e-5, rtol=1e-5), "mismatch vs JAX reference"
    print("KERNEL_OK")
</pallas_src>

<mosaic_0001>
module attributes {stable_mosaic.version = 11 : i64} {
  func.func @bilstm_kernel(%arg0: memref<192x256xf32, #tpu.memory_space<vmem>>, %arg1: memref<8x16xf32, #tpu.memory_space<vmem>>) attributes {dimension_semantics = [], scalar_prefetch = 0 : i64, scratch_operands = 0 : i64, tpu.core_type = #tpu.core_type<tc>} {
    %c0 = arith.constant 0 : index
    %c0_0 = arith.constant 0 : index
    %0 = vector.load %arg0[%c0, %c0_0] : memref<192x256xf32, #tpu.memory_space<vmem>>, vector<64x16xf32>
    %c64 = arith.constant 64 : index
    %c0_1 = arith.constant 0 : index
    %1 = vector.load %arg0[%c64, %c0_1] : memref<192x256xf32, #tpu.memory_space<vmem>>, vector<16x256xf32>
    %c80 = arith.constant 80 : index
    %c0_2 = arith.constant 0 : index
    %2 = vector.load %arg0[%c80, %c0_2] : memref<192x256xf32, #tpu.memory_space<vmem>>, vector<32x128xf32>
    %c112 = arith.constant 112 : index
    %c0_3 = arith.constant 0 : index
    %3 = vector.load %arg0[%c112, %c0_3] : memref<192x256xf32, #tpu.memory_space<vmem>>, vector<1x256xf32>
    %c120 = arith.constant 120 : index
    %c0_4 = arith.constant 0 : index
    %4 = vector.load %arg0[%c120, %c0_4] : memref<192x256xf32, #tpu.memory_space<vmem>>, vector<32x16xf32>
    %c152 = arith.constant 152 : index
    %c0_5 = arith.constant 0 : index
    %5 = vector.load %arg0[%c152, %c0_5] : memref<192x256xf32, #tpu.memory_space<vmem>>, vector<32x16xf32>
    %c184 = arith.constant 184 : index
    %c0_6 = arith.constant 0 : index
    %6 = vector.load %arg0[%c184, %c0_6] : memref<192x256xf32, #tpu.memory_space<vmem>>, vector<1x16xf32>
    %cst = arith.constant dense<0.000000e+00> : vector<64x256xf32>
    %7 = tpu.matmul %0, %1, %cst {dimension_numbers = #tpu.dot_dimension_numbers<[1], [0], [0], [1], [0, 0, 1, 1], [], []>, precision = #tpu.contract_precision<fp32>} : vector<64x16xf32>, vector<16x256xf32>, vector<64x256xf32> -> vector<64x256xf32>
    %8 = vector.broadcast %3 : vector<1x256xf32> to vector<64x256xf32>
    %9 = arith.addf %7, %8 : vector<64x256xf32>
    %10 = tpu.iota {dimensions = array<i32: 1>} : vector<8x128xi32>
    %c64_i32 = arith.constant 64 : i32
    %11 = vector.broadcast %c64_i32 : i32 to vector<8x128xi32>
    %12 = arith.cmpi sge, %10, %11 : vector<8x128xi32>
    %c96_i32 = arith.constant 96 : i32
    %13 = vector.broadcast %c96_i32 : i32 to vector<8x128xi32>
    %14 = arith.cmpi slt, %10, %13 : vector<8x128xi32>
    %15 = arith.andi %12, %14 : vector<8x128xi1>
    %cst_7 = arith.constant 1.000000e+00 : f32
    %cst_8 = arith.constant 5.000000e-01 : f32
    %16 = vector.broadcast %cst_7 : f32 to vector<8x128xf32>
    %17 = vector.broadcast %cst_8 : f32 to vector<8x128xf32>
    %18 = arith.select %15, %16, %17 : vector<8x128xi1>, vector<8x128xf32>
    %cst_9 = arith.constant 0.000000e+00 : f32
    %19 = vector.broadcast %cst_9 : f32 to vector<8x32xf32>
    %cst_10 = arith.constant 0.000000e+00 : f32
    %20 = vector.broadcast %cst_10 : f32 to vector<8x32xf32>
    %21 = vector.extract_strided_slice %9 {offsets = [0, 0], sizes = [8, 128], strides = [1, 1]} : vector<64x256xf32> to vector<8x128xf32>
    %cst_11 = arith.constant dense<0.000000e+00> : vector<8x128xf32>
    %22 = tpu.matmul %19, %2, %cst_11 {dimension_numbers = #tpu.dot_dimension_numbers<[1], [0], [0], [1], [0, 0, 1, 1], [], []>, precision = #tpu.contract_precision<fp32>} : vector<8x32xf32>, vector<32x128xf32>, vector<8x128xf32> -> vector<8x128xf32>
    %23 = arith.addf %21, %22 : vector<8x128xf32>
    %24 = arith.mulf %23, %18 : vector<8x128xf32>
    %25 = math.tanh %24 : vector<8x128xf32>
    %26 = vector.extract_strided_slice %25 {offsets = [0, 0], sizes = [8, 32], strides = [1, 1]} : vector<8x128xf32> to vector<8x32xf32>
    %cst_12 = arith.constant 5.000000e-01 : f32
    %27 = vector.broadcast %cst_12 : f32 to vector<8x32xf32>
    %28 = arith.mulf %27, %26 : vector<8x32xf32>
    %cst_13 = arith.constant 5.000000e-01 : f32
    %29 = vector.broadcast %cst_13 : f32 to vector<8x32xf32>
    %30 = arith.addf %28, %29 : vector<8x32xf32>
    %31 = vector.extract_strided_slice %25 {offsets = [0, 32], sizes = [8, 32], strides = [1, 1]} : vector<8x128xf32> to vector<8x32xf32>
    %cst_14 = arith.constant 5.000000e-01 : f32
    %32 = vector.broadcast %cst_14 : f32 to vector<8x32xf32>
    %33 = arith.mulf %32, %31 : vector<8x32xf32>
    %cst_15 = arith.constant 5.000000e-01 : f32
    %34 = vector.broadcast %cst_15 : f32 to vector<8x32xf32>
    %35 = arith.addf %33, %34 : vector<8x32xf32>
    %36 = vector.extract_strided_slice %25 {offsets = [0, 64], sizes = [8, 32], strides = [1, 1]} : vector<8x128xf32> to vector<8x32xf32>
    %37 = vector.extract_strided_slice %25 {offsets = [0, 96], sizes = [8, 32], strides = [1, 1]} : vector<8x128xf32> to vector<8x32xf32>
    %cst_16 = arith.constant 5.000000e-01 : f32
    %38 = vector.broadcast %cst_16 : f32 to vector<8x32xf32>
    %39 = arith.mulf %38, %37 : vector<8x32xf32>
    %cst_17 = arith.constant 5.000000e-01 : f32
    %40 = vector.broadcast %cst_17 : f32 to vector<8x32xf32>
    %41 = arith.addf %39, %40 : vector<8x32xf32>
    %42 = arith.mulf %35, %20 : vector<8x32xf32>
    %43 = arith.mulf %30, %36 : vector<8x32xf32>
    %44 = arith.addf %42, %43 : vector<8x32xf32>
    %45 = math.tanh %44 : vector<8x32xf32>
    %46 = arith.mulf %41, %45 : vector<8x32xf32>
    %47 = vector.extract_strided_slice %9 {offsets = [8, 0], sizes = [8, 128], strides = [1, 1]} : vector<64x256xf32> to vector<8x128xf32>
    %cst_18 = arith.constant dense<0.000000e+00> : vector<8x128xf32>
    %48 = tpu.matmul %46, %2, %cst_18 {dimension_numbers = #tpu.dot_dimension_numbers<[1], [0], [0], [1], [0, 0, 1, 1], [], []>, precision = #tpu.contract_precision<fp32>} : vector<8x32xf32>, vector<32x128xf32>, vector<8x128xf32> -> vector<8x128xf32>
    %49 = arith.addf %47, %48 : vector<8x128xf32>
    %50 = arith.mulf %49, %18 : vector<8x128xf32>
    %51 = math.tanh %50 : vector<8x128xf32>
    %52 = vector.extract_strided_slice %51 {offsets = [0, 0], sizes = [8, 32], strides = [1, 1]} : vector<8x128xf32> to vector<8x32xf32>
    %cst_19 = arith.constant 5.000000e-01 : f32
    %53 = vector.broadcast %cst_19 : f32 to vector<8x32xf32>
    %54 = arith.mulf %53, %52 : vector<8x32xf32>
    %cst_20 = arith.constant 5.000000e-01 : f32
    %55 = vector.broadcast %cst_20 : f32 to vector<8x32xf32>
    %56 = arith.addf %54, %55 : vector<8x32xf32>
    %57 = vector.extract_strided_slice %51 {offsets = [0, 32], sizes = [8, 32], strides = [1, 1]} : vector<8x128xf32> to vector<8x32xf32>
    %cst_21 = arith.constant 5.000000e-01 : f32
    %58 = vector.broadcast %cst_21 : f32 to vector<8x32xf32>
    %59 = arith.mulf %58, %57 : vector<8x32xf32>
    %cst_22 = arith.constant 5.000000e-01 : f32
    %60 = vector.broadcast %cst_22 : f32 to vector<8x32xf32>
    %61 = arith.addf %59, %60 : vector<8x32xf32>
    %62 = vector.extract_strided_slice %51 {offsets = [0, 64], sizes = [8, 32], strides = [1, 1]} : vector<8x128xf32> to vector<8x32xf32>
    %63 = vector.extract_strided_slice %51 {offsets = [0, 96], sizes = [8, 32], strides = [1, 1]} : vector<8x128xf32> to vector<8x32xf32>
    %cst_23 = arith.constant 5.000000e-01 : f32
    %64 = vector.broadcast %cst_23 : f32 to vector<8x32xf32>
    %65 = arith.mulf %64, %63 : vector<8x32xf32>
    %cst_24 = arith.constant 5.000000e-01 : f32
    %66 = vector.broadcast %cst_24 : f32 to vector<8x32xf32>
    %67 = arith.addf %65, %66 : vector<8x32xf32>
    %68 = arith.mulf %61, %44 : vector<8x32xf32>
    %69 = arith.mulf %56, %62 : vector<8x32xf32>
    %70 = arith.addf %68, %69 : vector<8x32xf32>
    %71 = math.tanh %70 : vector<8x32xf32>
    %72 = arith.mulf %67, %71 : vector<8x32xf32>
    %73 = vector.extract_strided_slice %9 {offsets = [16, 0], sizes = [8, 128], strides = [1, 1]} : vector<64x256xf32> to vector<8x128xf32>
    %cst_25 = arith.constant dense<0.000000e+00> : vector<8x128xf32>
    %74 = tpu.matmul %72, %2, %cst_25 {dimension_numbers = #tpu.dot_dimension_numbers<[1], [0], [0], [1], [0, 0, 1, 1], [], []>, precision = #tpu.contract_precision<fp32>} : vector<8x32xf32>, vector<32x128xf32>, vector<8x128xf32> -> vector<8x128xf32>
    %75 = arith.addf %73, %74 : vector<8x128xf32>
    %76 = arith.mulf %75, %18 : vector<8x128xf32>
    %77 = math.tanh %76 : vector<8x128xf32>
    %78 = vector.extract_strided_slice %77 {offsets = [0, 0], sizes = [8, 32], strides = [1, 1]} : vector<8x128xf32> to vector<8x32xf32>
    %cst_26 = arith.constant 5.000000e-01 : f32
    %79 = vector.broadcast %cst_26 : f32 to vector<8x32xf32>
    %80 = arith.mulf %79, %78 : vector<8x32xf32>
    %cst_27 = arith.constant 5.000000e-01 : f32
    %81 = vector.broadcast %cst_27 : f32 to vector<8x32xf32>
    %82 = arith.addf %80, %81 : vector<8x32xf32>
    %83 = vector.extract_strided_slice %77 {offsets = [0, 32], sizes = [8, 32], strides = [1, 1]} : vector<8x128xf32> to vector<8x32xf32>
    %cst_28 = arith.constant 5.000000e-01 : f32
    %84 = vector.broadcast %cst_28 : f32 to vector<8x32xf32>
    %85 = arith.mulf %84, %83 : vector<8x32xf32>
    %cst_29 = arith.constant 5.000000e-01 : f32
    %86 = vector.broadcast %cst_29 : f32 to vector<8x32xf32>
    %87 = arith.addf %85, %86 : vector<8x32xf32>
    %88 = vector.extract_strided_slice %77 {offsets = [0, 64], sizes = [8, 32], strides = [1, 1]} : vector<8x128xf32> to vector<8x32xf32>
    %89 = vector.extract_strided_slice %77 {offsets = [0, 96], sizes = [8, 32], strides = [1, 1]} : vector<8x128xf32> to vector<8x32xf32>
    %cst_30 = arith.constant 5.000000e-01 : f32
    %90 = vector.broadcast %cst_30 : f32 to vector<8x32xf32>
    %91 = arith.mulf %90, %89 : vector<8x32xf32>
    %cst_31 = arith.constant 5.000000e-01 : f32
    %92 = vector.broadcast %cst_31 : f32 to vector<8x32xf32>
    %93 = arith.addf %91, %92 : vector<8x32xf32>
    %94 = arith.mulf %87, %70 : vector<8x32xf32>
    %95 = arith.mulf %82, %88 : vector<8x32xf32>
    %96 = arith.addf %94, %95 : vector<8x32xf32>
    %97 = math.tanh %96 : vector<8x32xf32>
    %98 = arith.mulf %93, %97 : vector<8x32xf32>
    %99 = vector.extract_strided_slice %9 {offsets = [24, 0], sizes = [8, 128], strides = [1, 1]} : vector<64x256xf32> to vector<8x128xf32>
    %cst_32 = arith.constant dense<0.000000e+00> : vector<8x128xf32>
    %100 = tpu.matmul %98, %2, %cst_32 {dimension_numbers = #tpu.dot_dimension_numbers<[1], [0], [0], [1], [0, 0, 1, 1], [], []>, precision = #tpu.contract_precision<fp32>} : vector<8x32xf32>, vector<32x128xf32>, vector<8x128xf32> -> vector<8x128xf32>
    %101 = arith.addf %99, %100 : vector<8x128xf32>
    %102 = arith.mulf %101, %18 : vector<8x128xf32>
    %103 = math.tanh %102 : vector<8x128xf32>
    %104 = vector.extract_strided_slice %103 {offsets = [0, 0], sizes = [8, 32], strides = [1, 1]} : vector<8x128xf32> to vector<8x32xf32>
    %cst_33 = arith.constant 5.000000e-01 : f32
    %105 = vector.broadcast %cst_33 : f32 to vector<8x32xf32>
    %106 = arith.mulf %105, %104 : vector<8x32xf32>
    %cst_34 = arith.constant 5.000000e-01 : f32
    %107 = vector.broadcast %cst_34 : f32 to vector<8x32xf32>
    %108 = arith.addf %106, %107 : vector<8x32xf32>
    %109 = vector.extract_strided_slice %103 {offsets = [0, 32], sizes = [8, 32], strides = [1, 1]} : vector<8x128xf32> to vector<8x32xf32>
    %cst_35 = arith.constant 5.000000e-01 : f32
    %110 = vector.broadcast %cst_35 : f32 to vector<8x32xf32>
    %111 = arith.mulf %110, %109 : vector<8x32xf32>
    %cst_36 = arith.constant 5.000000e-01 : f32
    %112 = vector.broadcast %cst_36 : f32 to vector<8x32xf32>
    %113 = arith.addf %111, %112 : vector<8x32xf32>
    %114 = vector.extract_strided_slice %103 {offsets = [0, 64], sizes = [8, 32], strides = [1, 1]} : vector<8x128xf32> to vector<8x32xf32>
    %115 = vector.extract_strided_slice %103 {offsets = [0, 96], sizes = [8, 32], strides = [1, 1]} : vector<8x128xf32> to vector<8x32xf32>
    %cst_37 = arith.constant 5.000000e-01 : f32
    %116 = vector.broadcast %cst_37 : f32 to vector<8x32xf32>
    %117 = arith.mulf %116, %115 : vector<8x32xf32>
    %cst_38 = arith.constant 5.000000e-01 : f32
    %118 = vector.broadcast %cst_38 : f32 to vector<8x32xf32>
    %119 = arith.addf %117, %118 : vector<8x32xf32>
    %120 = arith.mulf %113, %96 : vector<8x32xf32>
    %121 = arith.mulf %108, %114 : vector<8x32xf32>
    %122 = arith.addf %120, %121 : vector<8x32xf32>
    %123 = math.tanh %122 : vector<8x32xf32>
    %124 = arith.mulf %119, %123 : vector<8x32xf32>
    %125 = vector.extract_strided_slice %9 {offsets = [32, 0], sizes = [8, 128], strides = [1, 1]} : vector<64x256xf32> to vector<8x128xf32>
    %cst_39 = arith.constant dense<0.000000e+00> : vector<8x128xf32>
    %126 = tpu.matmul %124, %2, %cst_39 {dimension_numbers = #tpu.dot_dimension_numbers<[1], [0], [0], [1], [0, 0, 1, 1], [], []>, precision = #tpu.contract_precision<fp32>} : vector<8x32xf32>, vector<32x128xf32>, vector<8x128xf32> -> vector<8x128xf32>
    %127 = arith.addf %125, %126 : vector<8x128xf32>
    %128 = arith.mulf %127, %18 : vector<8x128xf32>
    %129 = math.tanh %128 : vector<8x128xf32>
    %130 = vector.extract_strided_slice %129 {offsets = [0, 0], sizes = [8, 32], strides = [1, 1]} : vector<8x128xf32> to vector<8x32xf32>
    %cst_40 = arith.constant 5.000000e-01 : f32
    %131 = vector.broadcast %cst_40 : f32 to vector<8x32xf32>
    %132 = arith.mulf %131, %130 : vector<8x32xf32>
    %cst_41 = arith.constant 5.000000e-01 : f32
    %133 = vector.broadcast %cst_41 : f32 to vector<8x32xf32>
    %134 = arith.addf %132, %133 : vector<8x32xf32>
    %135 = vector.extract_strided_slice %129 {offsets = [0, 32], sizes = [8, 32], strides = [1, 1]} : vector<8x128xf32> to vector<8x32xf32>
    %cst_42 = arith.constant 5.000000e-01 : f32
    %136 = vector.broadcast %cst_42 : f32 to vector<8x32xf32>
    %137 = arith.mulf %136, %135 : vector<8x32xf32>
    %cst_43 = arith.constant 5.000000e-01 : f32
    %138 = vector.broadcast %cst_43 : f32 to vector<8x32xf32>
    %139 = arith.addf %137, %138 : vector<8x32xf32>
    %140 = vector.extract_strided_slice %129 {offsets = [0, 64], sizes = [8, 32], strides = [1, 1]} : vector<8x128xf32> to vector<8x32xf32>
    %141 = vector.extract_strided_slice %129 {offsets = [0, 96], sizes = [8, 32], strides = [1, 1]} : vector<8x128xf32> to vector<8x32xf32>
    %cst_44 = arith.constant 5.000000e-01 : f32
    %142 = vector.broadcast %cst_44 : f32 to vector<8x32xf32>
    %143 = arith.mulf %142, %141 : vector<8x32xf32>
    %cst_45 = arith.constant 5.000000e-01 : f32
    %144 = vector.broadcast %cst_45 : f32 to vector<8x32xf32>
    %145 = arith.addf %143, %144 : vector<8x32xf32>
    %146 = arith.mulf %139, %122 : vector<8x32xf32>
    %147 = arith.mulf %134, %140 : vector<8x32xf32>
    %148 = arith.addf %146, %147 : vector<8x32xf32>
    %149 = math.tanh %148 : vector<8x32xf32>
    %150 = arith.mulf %145, %149 : vector<8x32xf32>
    %151 = vector.extract_strided_slice %9 {offsets = [40, 0], sizes = [8, 128], strides = [1, 1]} : vector<64x256xf32> to vector<8x128xf32>
    %cst_46 = arith.constant dense<0.000000e+00> : vector<8x128xf32>
    %152 = tpu.matmul %150, %2, %cst_46 {dimension_numbers = #tpu.dot_dimension_numbers<[1], [0], [0], [1], [0, 0, 1, 1], [], []>, precision = #tpu.contract_precision<fp32>} : vector<8x32xf32>, vector<32x128xf32>, vector<8x128xf32> -> vector<8x128xf32>
    %153 = arith.addf %151, %152 : vector<8x128xf32>
    %154 = arith.mulf %153, %18 : vector<8x128xf32>
    %155 = math.tanh %154 : vector<8x128xf32>
    %156 = vector.extract_strided_slice %155 {offsets = [0, 0], sizes = [8, 32], strides = [1, 1]} : vector<8x128xf32> to vector<8x32xf32>
    %cst_47 = arith.constant 5.000000e-01 : f32
    %157 = vector.broadcast %cst_47 : f32 to vector<8x32xf32>
    %158 = arith.mulf %157, %156 : vector<8x32xf32>
    %cst_48 = arith.constant 5.000000e-01 : f32
    %159 = vector.broadcast %cst_48 : f32 to vector<8x32xf32>
    %160 = arith.addf %158, %159 : vector<8x32xf32>
    %161 = vector.extract_strided_slice %155 {offsets = [0, 32], sizes = [8, 32], strides = [1, 1]} : vector<8x128xf32> to vector<8x32xf32>
    %cst_49 = arith.constant 5.000000e-01 : f32
    %162 = vector.broadcast %cst_49 : f32 to vector<8x32xf32>
    %163 = arith.mulf %162, %161 : vector<8x32xf32>
    %cst_50 = arith.constant 5.000000e-01 : f32
    %164 = vector.broadcast %cst_50 : f32 to vector<8x32xf32>
    %165 = arith.addf %163, %164 : vector<8x32xf32>
    %166 = vector.extract_strided_slice %155 {offsets = [0, 64], sizes = [8, 32], strides = [1, 1]} : vector<8x128xf32> to vector<8x32xf32>
    %167 = vector.extract_strided_slice %155 {offsets = [0, 96], sizes = [8, 32], strides = [1, 1]} : vector<8x128xf32> to vector<8x32xf32>
    %cst_51 = arith.constant 5.000000e-01 : f32
    %168 = vector.broadcast %cst_51 : f32 to vector<8x32xf32>
    %169 = arith.mulf %168, %167 : vector<8x32xf32>
    %cst_52 = arith.constant 5.000000e-01 : f32
    %170 = vector.broadcast %cst_52 : f32 to vector<8x32xf32>
    %171 = arith.addf %169, %170 : vector<8x32xf32>
    %172 = arith.mulf %165, %148 : vector<8x32xf32>
    %173 = arith.mulf %160, %166 : vector<8x32xf32>
    %174 = arith.addf %172, %173 : vector<8x32xf32>
    %175 = math.tanh %174 : vector<8x32xf32>
    %176 = arith.mulf %171, %175 : vector<8x32xf32>
    %177 = vector.extract_strided_slice %9 {offsets = [48, 0], sizes = [8, 128], strides = [1, 1]} : vector<64x256xf32> to vector<8x128xf32>
    %cst_53 = arith.constant dense<0.000000e+00> : vector<8x128xf32>
    %178 = tpu.matmul %176, %2, %cst_53 {dimension_numbers = #tpu.dot_dimension_numbers<[1], [0], [0], [1], [0, 0, 1, 1], [], []>, precision = #tpu.contract_precision<fp32>} : vector<8x32xf32>, vector<32x128xf32>, vector<8x128xf32> -> vector<8x128xf32>
    %179 = arith.addf %177, %178 : vector<8x128xf32>
    %180 = arith.mulf %179, %18 : vector<8x128xf32>
    %181 = math.tanh %180 : vector<8x128xf32>
    %182 = vector.extract_strided_slice %181 {offsets = [0, 0], sizes = [8, 32], strides = [1, 1]} : vector<8x128xf32> to vector<8x32xf32>
    %cst_54 = arith.constant 5.000000e-01 : f32
    %183 = vector.broadcast %cst_54 : f32 to vector<8x32xf32>
    %184 = arith.mulf %183, %182 : vector<8x32xf32>
    %cst_55 = arith.constant 5.000000e-01 : f32
    %185 = vector.broadcast %cst_55 : f32 to vector<8x32xf32>
    %186 = arith.addf %184, %185 : vector<8x32xf32>
    %187 = vector.extract_strided_slice %181 {offsets = [0, 32], sizes = [8, 32], strides = [1, 1]} : vector<8x128xf32> to vector<8x32xf32>
    %cst_56 = arith.constant 5.000000e-01 : f32
    %188 = vector.broadcast %cst_56 : f32 to vector<8x32xf32>
    %189 = arith.mulf %188, %187 : vector<8x32xf32>
    %cst_57 = arith.constant 5.000000e-01 : f32
    %190 = vector.broadcast %cst_57 : f32 to vector<8x32xf32>
    %191 = arith.addf %189, %190 : vector<8x32xf32>
    %192 = vector.extract_strided_slice %181 {offsets = [0, 64], sizes = [8, 32], strides = [1, 1]} : vector<8x128xf32> to vector<8x32xf32>
    %193 = vector.extract_strided_slice %181 {offsets = [0, 96], sizes = [8, 32], strides = [1, 1]} : vector<8x128xf32> to vector<8x32xf32>
    %cst_58 = arith.constant 5.000000e-01 : f32
    %194 = vector.broadcast %cst_58 : f32 to vector<8x32xf32>
    %195 = arith.mulf %194, %193 : vector<8x32xf32>
    %cst_59 = arith.constant 5.000000e-01 : f32
    %196 = vector.broadcast %cst_59 : f32 to vector<8x32xf32>
    %197 = arith.addf %195, %196 : vector<8x32xf32>
    %198 = arith.mulf %191, %174 : vector<8x32xf32>
    %199 = arith.mulf %186, %192 : vector<8x32xf32>
    %200 = arith.addf %198, %199 : vector<8x32xf32>
    %201 = math.tanh %200 : vector<8x32xf32>
    %202 = arith.mulf %197, %201 : vector<8x32xf32>
    %203 = vector.extract_strided_slice %9 {offsets = [56, 0], sizes = [8, 128], strides = [1, 1]} : vector<64x256xf32> to vector<8x128xf32>
    %cst_60 = arith.constant dense<0.000000e+00> : vector<8x128xf32>
    %204 = tpu.matmul %202, %2, %cst_60 {dimension_numbers = #tpu.dot_dimension_numbers<[1], [0], [0], [1], [0, 0, 1, 1], [], []>, precision = #tpu.contract_precision<fp32>} : vector<8x32xf32>, vector<32x128xf32>, vector<8x128xf32> -> vector<8x128xf32>
    %205 = arith.addf %203, %204 : vector<8x128xf32>
    %206 = arith.mulf %205, %18 : vector<8x128xf32>
    %207 = math.tanh %206 : vector<8x128xf32>
    %208 = vector.extract_strided_slice %207 {offsets = [0, 0], sizes = [8, 32], strides = [1, 1]} : vector<8x128xf32> to vector<8x32xf32>
    %cst_61 = arith.constant 5.000000e-01 : f32
    %209 = vector.broadcast %cst_61 : f32 to vector<8x32xf32>
    %210 = arith.mulf %209, %208 : vector<8x32xf32>
    %cst_62 = arith.constant 5.000000e-01 : f32
    %211 = vector.broadcast %cst_62 : f32 to vector<8x32xf32>
    %212 = arith.addf %210, %211 : vector<8x32xf32>
    %213 = vector.extract_strided_slice %207 {offsets = [0, 32], sizes = [8, 32], strides = [1, 1]} : vector<8x128xf32> to vector<8x32xf32>
    %cst_63 = arith.constant 5.000000e-01 : f32
    %214 = vector.broadcast %cst_63 : f32 to vector<8x32xf32>
    %215 = arith.mulf %214, %213 : vector<8x32xf32>
    %cst_64 = arith.constant 5.000000e-01 : f32
    %216 = vector.broadcast %cst_64 : f32 to vector<8x32xf32>
    %217 = arith.addf %215, %216 : vector<8x32xf32>
    %218 = vector.extract_strided_slice %207 {offsets = [0, 64], sizes = [8, 32], strides = [1, 1]} : vector<8x128xf32> to vector<8x32xf32>
    %219 = vector.extract_strided_slice %207 {offsets = [0, 96], sizes = [8, 32], strides = [1, 1]} : vector<8x128xf32> to vector<8x32xf32>
    %cst_65 = arith.constant 5.000000e-01 : f32
    %220 = vector.broadcast %cst_65 : f32 to vector<8x32xf32>
    %221 = arith.mulf %220, %219 : vector<8x32xf32>
    %cst_66 = arith.constant 5.000000e-01 : f32
    %222 = vector.broadcast %cst_66 : f32 to vector<8x32xf32>
    %223 = arith.addf %221, %222 : vector<8x32xf32>
    %224 = arith.mulf %217, %200 : vector<8x32xf32>
    %225 = arith.mulf %212, %218 : vector<8x32xf32>
    %226 = arith.addf %224, %225 : vector<8x32xf32>
    %227 = math.tanh %226 : vector<8x32xf32>
    %228 = arith.mulf %223, %227 : vector<8x32xf32>
    %229 = vector.extract_strided_slice %9 {offsets = [56, 128], sizes = [8, 128], strides = [1, 1]} : vector<64x256xf32> to vector<8x128xf32>
    %230 = arith.mulf %229, %18 : vector<8x128xf32>
    %231 = math.tanh %230 : vector<8x128xf32>
    %232 = vector.extract_strided_slice %231 {offsets = [0, 0], sizes = [8, 32], strides = [1, 1]} : vector<8x128xf32> to vector<8x32xf32>
    %cst_67 = arith.constant 5.000000e-01 : f32
    %233 = vector.broadcast %cst_67 : f32 to vector<8x32xf32>
    %234 = arith.mulf %233, %232 : vector<8x32xf32>
    %cst_68 = arith.constant 5.000000e-01 : f32
    %235 = vector.broadcast %cst_68 : f32 to vector<8x32xf32>
    %236 = arith.addf %234, %235 : vector<8x32xf32>
    %237 = vector.extract_strided_slice %231 {offsets = [0, 64], sizes = [8, 32], strides = [1, 1]} : vector<8x128xf32> to vector<8x32xf32>
    %238 = vector.extract_strided_slice %231 {offsets = [0, 96], sizes = [8, 32], strides = [1, 1]} : vector<8x128xf32> to vector<8x32xf32>
    %cst_69 = arith.constant 5.000000e-01 : f32
    %239 = vector.broadcast %cst_69 : f32 to vector<8x32xf32>
    %240 = arith.mulf %239, %238 : vector<8x32xf32>
    %cst_70 = arith.constant 5.000000e-01 : f32
    %241 = vector.broadcast %cst_70 : f32 to vector<8x32xf32>
    %242 = arith.addf %240, %241 : vector<8x32xf32>
    %243 = arith.mulf %236, %237 : vector<8x32xf32>
    %244 = math.tanh %243 : vector<8x32xf32>
    %245 = arith.mulf %242, %244 : vector<8x32xf32>
    %cst_71 = arith.constant dense<0.000000e+00> : vector<8x16xf32>
    %246 = tpu.matmul %228, %4, %cst_71 {dimension_numbers = #tpu.dot_dimension_numbers<[1], [0], [0], [1], [0, 0, 1, 1], [], []>, precision = #tpu.contract_precision<fp32>} : vector<8x32xf32>, vector<32x16xf32>, vector<8x16xf32> -> vector<8x16xf32>
    %cst_72 = arith.constant dense<0.000000e+00> : vector<8x16xf32>
    %247 = tpu.matmul %245, %5, %cst_72 {dimension_numbers = #tpu.dot_dimension_numbers<[1], [0], [0], [1], [0, 0, 1, 1], [], []>, precision = #tpu.contract_precision<fp32>} : vector<8x32xf32>, vector<32x16xf32>, vector<8x16xf32> -> vector<8x16xf32>
    %248 = arith.addf %246, %247 : vector<8x16xf32>
    %249 = vector.broadcast %6 : vector<1x16xf32> to vector<8x16xf32>
    %250 = arith.addf %248, %249 : vector<8x16xf32>
    %c0_73 = arith.constant 0 : index
    %c0_74 = arith.constant 0 : index
    %251 = vector.load %arg1[%c0_73, %c0_74] : memref<8x16xf32, #tpu.memory_space<vmem>>, vector<8x16xf32>
    tpu.vector_store %arg1[%c0_73, %c0_74], %250 {strides = array<i32>} : memref<8x16xf32, #tpu.memory_space<vmem>>, vector<8x16xf32>,
    return
  }
}

</mosaic_0001>

<bundles_post_ra>
// kernel: tpu_custom_call.1
= control target key start
LH: loop header
LB: loop body
LE: loop exit
PB: predicated region body
PF: predicated region fallthrough
CT: control target
= control target key end

     0   :  { %6 = vsyncpa [#allocation3], 0  ;;  %s8138_s0 = inlined_call_operand.hbm [shape: f32[192,256], index: 0, kind: input, shape index: {}]   ;;  %s8139_s1 = inlined_call_operand.hbm [shape: f32[8,16], index: 1, kind: output, shape index: {}]  }
   0x1   :  { %7 = vsyncpa [#allocation4], 0  ;;  %s7041_s6 = smov [#allocation2]  }
   0x2   :  { %s13_s7 = sshll.u32 %s7041_s6, 4  ;;  %s14_s7 = int_to_ptr.vmem [resolvable:$true] %s13_s7 }
   0x3   :  { %s7005_s8 = scalar_lea.vmem %s14_s7, 6144  ;;  %p7010_p1 = scmp.lt.s32.totalorder %s14_s7, %s14_s7 }
   0x4   :  { %p7006_p0 = scmp.ne.s32.totalorder %s14_s7, %s7005_s8  ;;  %p7011_p2 = scmp.lt.s32.totalorder %s7005_s8, %s7005_s8 }
   0x6   :  { %p7012_p3 = por %p7011_p2, %p7010_p1 }
   0x8   :  { %p7013_p4 = pnand %p7012_p3, %p7006_p0 }
   0xa   :  { %7016 = shalt.err (!%p7013_p4)
}
   0xb   :  { %s7042_s9 = smov 256   ;;  %s7043_s10 = smov 16  }
   0xc   :  { %19 = dma.hbm_to_vmem [thread:$0]  %s8138_s0, 6144, %s14_s7, [#allocation3], %s7042_s9, %s7042_s9, %s7043_s10  }
   0xd   :  { %7037 = dma.done.wait [#allocation3], 6144  }
   0xe   :  { %7038 = vsyncadd [#allocation3], 4294961152  ;;  %v7044_v0 = vmov 0.0   ;;  %vm61_vm0 = vcmask 130048   ;;  %v34_v1 = vld [vmem:[#allocation2 + $0x98] sm:$0xff]  ;;  %v33_v2 = vld [vmem:[#allocation2 + $0x90] sm:$0xff] }
   0xf   :  { %154 = vmatprep.mubr.f32.mxu0 %v7044_v0  ;;  %320 = vmatprep.mubr.f32.mxu1 %v7044_v0  ;;  %v32_v3 = vld [vmem:[#allocation2 + $0x88] sm:$0xff]  ;;  %v7066_v4 = vand.u32 4294901760, %v34_v1  ;;  %v7068_v5 = vand.u32 4294901760, %v33_v2  ;;  %v31_v7 = vld [vmem:[#allocation2 + $0x80] sm:$0xff]  ;;  %v24_v9 = vld [vmem:[#allocation2 + $0x10] sm:$0xff]  ;;  %vm7045_vm1 = vmmov 0  }
  0x10   :  { %v7070_v6 = vand.u32 4294901760, %v32_v3  ;;  %v23_v8 = vld [vmem:[#allocation2] sm:$0xff]  ;;  %v7072_v10 = vand.u32 4294901760, %v31_v7  ;;  %v66_v12 = vsel %vm61_vm0, %v24_v9, 0  ;;  %v26_v14 = vld [vmem:[#allocation2 + $0x30] sm:$0xff]  ;;  %s7047_s0 = smov 64  }
  0x11   :  { %v63_v11 = vsel %vm61_vm0, %v23_v8, 0  ;;  %v25_v13 = vld [vmem:[#allocation2 + $0x20] sm:$0xff]  ;;  %115 = vmatprep.subr.mxu0 %v7066_v4  ;;  %v7078_v15 = vsub.f32 %v34_v1, %v7066_v4  ;;  %v7083_v17 = vsub.f32 %v33_v2, %v7068_v5  ;;  %v7092_v20 = vand.u32 4294901760, %v66_v12  ;;  %v28_v40 = vld [vmem:[#allocation2 + $0x50] sm:$0xff]  ;;  %s7048_s13 = smov 32   ;;  %s7049_s14 = smov 96  }
  0x12   :  { %v7080_v16 = vand.u32 4294901760, %v63_v11  ;;  %v7086_v18 = vsub.f32 %v32_v3, %v7070_v6  ;;  %117 = vmatpush1.msra.mxu0 %v7068_v5  ;;  %v7090_v19 = vsub.f32 %v31_v7, %v7072_v10  ;;  %v69_v21 = vsel %vm61_vm0, %v25_v13, 0  ;;  %v27_v39 = vld [vmem:[#allocation2 + $0x40] sm:$0xff]  ;;  %v30_v59 = vld [vmem:[#allocation2 + $0x70] sm:$0xff]  ;;  %s7050_s15 = smov [#allocation5]  }
  0x13   :  { %v72_v22 = vsel %vm61_vm0, %v26_v14, 0  ;;  %119 = vmatprep.subr.mxu0 %v7070_v6  ;;  %v266_v23 = vand.u32 4294901760, %v7078_v15  ;;  %v272_v25 = vand.u32 4294901760, %v7083_v17  ;;  %v7106_v28 = vsub.f32 %v66_v12, %v7092_v20  ;;  %v29_v51 = vld [vmem:[#allocation2 + $0x60] sm:$0xff]  ;;  %s5982_s16 = sshll.u32 %s7050_s15, 4  ;;  %s5983_s16 = int_to_ptr.vmem [resolvable:$true] %s5982_s16 }
  0x14   :  { %v7099_v24 = vsub.f32 %v63_v11, %v7080_v16  ;;  %v278_v26 = vand.u32 4294901760, %v7086_v18  ;;  %121 = vmatpush1.msra.mxu0 %v7072_v10  ;;  %v284_v27 = vand.u32 4294901760, %v7090_v19  ;;  %v7108_v29 = vand.u32 4294901760, %v69_v21  ;;  %s7017_s17 = scalar_lea.vmem %s5983_s16, 128  ;;  %p7022_p6 = scmp.lt.s32.totalorder %s5983_s16, %s5983_s16 }
  0x15   :  { %v7110_v30 = vand.u32 4294901760, %v72_v22  ;;  %v267_v31 = vsub.f32 %v7078_v15, %v266_v23  ;;  %v273_v33 = vsub.f32 %v7083_v17, %v272_v25  ;;  %400 = vmatprep.subr.mxu0 %v7078_v15  ;;  %v167_v36 = vand.u32 4294901760, %v7106_v28  ;;  %p7018_p5 = scmp.ne.s32.totalorder %s5983_s16, %s7017_s17  ;;  %p7023_p7 = scmp.lt.s32.totalorder %s7017_s17, %s7017_s17 }
  0x16   :  { %v157_v32 = vand.u32 4294901760, %v7099_v24  ;;  %v279_v34 = vsub.f32 %v7086_v18, %v278_v26  ;;  %v285_v35 = vsub.f32 %v7090_v19, %v284_v27  ;;  %v7128_v37 = vsub.f32 %v69_v21, %v7108_v29 }
  0x17   :  { %v7131_v38 = vsub.f32 %v72_v22, %v7110_v30  ;;  %v268_v41 = vand.u32 4294901760, %v267_v31  ;;  %v274_v43 = vand.u32 4294901760, %v273_v33  ;;  %v168_v46 = vsub.f32 %v7106_v28, %v167_v36  ;;  %p7024_p8 = por %p7023_p7, %p7022_p6 }
  0x18   :  { %v158_v42 = vsub.f32 %v7099_v24, %v157_v32  ;;  %v280_v44 = vand.u32 4294901760, %v279_v34  ;;  %v286_v45 = vand.u32 4294901760, %v285_v35  ;;  %v177_v47 = vand.u32 4294901760, %v7128_v37 }
  0x19   :  { %269 = vmatprep.subr.mxu1 %v268_v41  ;;  %v75_v49 = vsel %vm61_vm0, %v27_v39, 0  ;;  %v78_v50 = vsel %vm61_vm0, %v28_v40, 0  ;;  %v187_v52 = vand.u32 4294901760, %v7131_v38  ;;  %v169_v54 = vand.u32 4294901760, %v168_v46  ;;  %p7025_p9 = pnand %p7024_p8, %p7018_p5 }
  0x1a   :  { %v159_v48 = vand.u32 4294901760, %v158_v42  ;;  %275 = vmatpush1.msra.mxu1 %v274_v43  ;;  %v7143_v53 = vand.u32 4294901760, %v75_v49  ;;  %v178_v55 = vsub.f32 %v7128_v37, %v177_v47  ;;  %v7148_v56 = vand.u32 4294901760, %v78_v50 }
  0x1b   :  { %281 = vmatprep.subr.mxu1 %v280_v44  ;;  %v81_v58 = vsel %vm61_vm0, %v29_v51, 0  ;;  %v188_v60 = vsub.f32 %v7131_v38, %v187_v52  ;;  %v84_v2 = vsel %vm61_vm0, %v30_v59, 0  ;;  %vm884_vm5 = vcmask 261120  }
  0x1c   :  { %160 = vmatmul.mubr.f32.vlgmr.msra.gmra.mxu0 %v159_v48  ;;  %287 = vmatpush1.msra.mxu1 %v286_v45  ;;  %v7152_v57 = vsub.f32 %v75_v49, %v7143_v53  ;;  %v179_v61 = vand.u32 4294901760, %v178_v55  ;;  %v7165_v63 = vsub.f32 %v78_v50, %v7148_v56  ;;  %v7167_v1 = vand.u32 4294901760, %v81_v58  ;;  %v40_v45 = vld [vmem:[#allocation2 + $0xe0] ss:$8 sm:$0x3] }
  0x1d   :  { %403 = vmatpush1.msra.mxu0 %v7083_v17  ;;  %164 = vmatprep.mubr.f32.mxu0 %v7044_v0  ;;  %v189_v3 = vand.u32 4294901760, %v188_v60  ;;  %v7184_v11 = vand.u32 4294901760, %v84_v2 }
  0x1e   :  { %322 = vmatmul.mubr.f32.vlgmr.msra.gmra.mxu1 %v7080_v16  ;;  %529 = vmatprep.subr.mxu1 %v7066_v4  ;;  %v197_v62 = vand.u32 4294901760, %v7152_v57  ;;  %v207_v8 = vand.u32 4294901760, %v7165_v63  ;;  %v7182_v9 = vsub.f32 %v81_v58, %v7167_v1 }
  0x1f   :  { %326 = vmatprep.mubr.f32.mxu1 %v7044_v0  ;;  %531 = vmatpush1.msra.mxu1 %v7068_v5  ;;  %v7197_v21 = vsub.f32 %v84_v2, %v7184_v11 }
  0x20   :  { %170 = vmatmul.mubr.f32.gmra.mxu0 %v169_v54  ;;  %406 = vmatprep.subr.mxu0 %v7086_v18  ;;  %v198_v7 = vsub.f32 %v7152_v57, %v197_v62  ;;  %v208_v13 = vsub.f32 %v7165_v63, %v207_v8  ;;  %v217_v14 = vand.u32 4294901760, %v7182_v9 }
  0x21   :  { %174 = vmatprep.mubr.f32.mxu0 %v7044_v0  ;;  %409 = vmatpush1.msra.mxu0 %v7090_v19  ;;  %v227_v22 = vand.u32 4294901760, %v7197_v21  ;;  %v36_v19 = vld [vmem:[#allocation2 + $0xb0] sm:$0xff] }
  0x22   :  { %328 = vmatmul.mubr.f32.gmra.mxu1 %v7092_v20  ;;  %533 = vmatprep.subr.mxu1 %v7070_v6  ;;  %v199_v12 = vand.u32 4294901760, %v198_v7  ;;  %v218_v15 = vsub.f32 %v7182_v9, %v217_v14 }
  0x23   :  { %332 = vmatprep.mubr.f32.mxu1 %v7044_v0  ;;  %535 = vmatpush1.msra.mxu1 %v7072_v10  ;;  %v228_v31 = vsub.f32 %v7197_v21, %v227_v22 }
  0x24   :  { %180 = vmatmul.mubr.f32.gmra.mxu0 %v179_v61  ;;  %665 = vmatprep.subr.mxu0 %v266_v23  ;;  %v219_v23 = vand.u32 4294901760, %v218_v15 }
  0x25   :  { %184 = vmatprep.mubr.f32.mxu0 %v7044_v0  ;;  %789 = vmatprep.subr.mxu1 %v7066_v4  ;;  %v209_v4 = vand.u32 4294901760, %v208_v13  ;;  %v229_v33 = vand.u32 4294901760, %v228_v31 }
  0x26   :  { %334 = vmatmul.mubr.f32.gmra.mxu1 %v7108_v29 }
  0x27   :  { %338 = vmatprep.mubr.f32.mxu1 %v7044_v0 }
  0x28   :  { %190 = vmatmul.mubr.f32.gmra.mxu0 %v189_v3 }
  0x29   :  { %194 = vmatprep.mubr.f32.mxu0 %v7044_v0 }
  0x2a   :  { %340 = vmatmul.mubr.f32.gmra.mxu1 %v7110_v30 }
  0x2b   :  { %344 = vmatprep.mubr.f32.mxu1 %v7044_v0 }
  0x2c   :  { %200 = vmatmul.mubr.f32.gmra.mxu0 %v199_v12 }
  0x2d   :  { %204 = vmatprep.mubr.f32.mxu0 %v7044_v0 }
  0x2e   :  { %346 = vmatmul.mubr.f32.gmra.mxu1 %v7143_v53 }
  0x2f   :  { %350 = vmatprep.mubr.f32.mxu1 %v7044_v0 }
  0x30   :  { %210 = vmatmul.mubr.f32.gmra.mxu0 %v209_v4 }
  0x31   :  { %214 = vmatprep.mubr.f32.mxu0 %v7044_v0 }
  0x32   :  { %352 = vmatmul.mubr.f32.gmra.mxu1 %v7148_v56 }
  0x33   :  { %356 = vmatprep.mubr.f32.mxu1 %v7044_v0 }
  0x34   :  { %220 = vmatmul.mubr.f32.gmra.mxu0 %v219_v23 }
  0x35   :  { %224 = vmatprep.mubr.f32.mxu0 %v7044_v0 }
  0x36   :  { %358 = vmatmul.mubr.f32.gmra.mxu1 %v7167_v1 }
  0x37   :  { %362 = vmatprep.mubr.f32.mxu1 %v7044_v0 }
  0x38   :  { %230 = vmatmul.mubr.f32.gmra.mxu0 %v229_v33 }
  0x39   :  { %442 = vmatprep.mubr.f32.mxu0 %v7044_v0 }
  0x3a   :  { %364 = vmatmul.mubr.f32.gmra.mxu1 %v7184_v11 }
  0x3b   :  { %568 = vmatprep.mubr.f32.mxu1 %v7044_v0 }
  0x3c   :  { %445 = vmatmul.mubr.f32.vlgmr.msra.gmra.mxu0 %v7099_v24 }
  0x3d   :  { %669 = vmatpush1.msra.mxu0 %v272_v25  ;;  %449 = vmatprep.mubr.f32.mxu0 %v7044_v0 }
  0x3e   :  { %572 = vmatmul.mubr.f32.vlgmr.msra.gmra.mxu1 %v157_v32  ;;  %673 = vmatprep.subr.mxu0 %v278_v26  ;;  %v7275_v26 = vand.u32 4294901760, %v36_v19 }
  0x3f   :  { %791 = vmatpush1.msra.mxu1 %v7068_v5  ;;  %576 = vmatprep.mubr.f32.mxu1 %v7044_v0  ;;  %v38_v5 = vld [vmem:[#allocation2 + $0xd0] sm:$0xff] }
  0x40   :  { %452 = vmatmul.mubr.f32.gmra.mxu0 %v7106_v28  ;;  %793 = vmatprep.subr.mxu1 %v7070_v6  ;;  %v7252_v6 = vand.u32 4294901760, %v38_v5  ;;  %v7288_v34 = vsub.f32 %v36_v19, %v7275_v26 }
  0x41   :  { %456 = vmatprep.mubr.f32.mxu0 %v7044_v0  ;;  %677 = vmatpush1.msra.mxu0 %v284_v27  ;;  %v35_v27 = vld [vmem:[#allocation2 + $0xa0] sm:$0xff] }
  0x42   :  { %580 = vmatmul.mubr.f32.gmra.mxu1 %v167_v36  ;;  %6291 = vmatprep.subr.mxu0 %v7044_v0  ;;  %v7260_v17 = vsub.f32 %v38_v5, %v7252_v6  ;;  %v7290_v35 = vand.u32 4294901760, %v35_v27 }
  0x43   :  { %584 = vmatprep.mubr.f32.mxu1 %v7044_v0  ;;  %795 = vmatpush1.msra.mxu1 %v7072_v10  ;;  %v37_v10 = vld [vmem:[#allocation2 + $0xc0] sm:$0xff] }
  0x44   :  { %459 = vmatmul.mubr.f32.gmra.mxu0 %v7128_v37  ;;  %6302 = vmatprep.subr.mxu1 %v7044_v0  ;;  %v7262_v18 = vand.u32 4294901760, %v37_v10  ;;  %v7270_v24 = vand.u32 4294901760, %v7260_v17  ;;  %v7305_v39 = vsub.f32 %v35_v27, %v7290_v35 }
  0x45   :  { %463 = vmatprep.mubr.f32.mxu0 %v7044_v0 }
  0x46   :  { %588 = vmatmul.mubr.f32.gmra.mxu1 %v177_v47  ;;  %v7273_v25 = vsub.f32 %v37_v10, %v7262_v18  ;;  %v995_v28 = vsub.f32 %v7260_v17, %v7270_v24  ;;  %v7319_v42 = vand.u32 4294901760, %v7305_v39 }
  0x47   :  { %592 = vmatprep.mubr.f32.mxu1 %v7044_v0 }
  0x48   :  { %466 = vmatmul.mubr.f32.gmra.mxu0 %v7131_v38  ;;  %v7285_v32 = vand.u32 4294901760, %v7273_v25  ;;  %v7297_v36 = vand.u32 4294901760, %v995_v28  ;;  %v7302_v38 = vand.u32 4294901760, %v7288_v34  ;;  %v1016_v43 = vsub.f32 %v7305_v39, %v7319_v42 }
  0x49   :  { %470 = vmatprep.mubr.f32.mxu0 %v7044_v0 }
  0x4a   :  { %596 = vmatmul.mubr.f32.gmra.mxu1 %v187_v52  ;;  %v1002_v37 = vsub.f32 %v7273_v25, %v7285_v32  ;;  %v1009_v41 = vsub.f32 %v7288_v34, %v7302_v38 }
  0x4b   :  { %600 = vmatprep.mubr.f32.mxu1 %v7044_v0 }
  0x4c   :  { %473 = vmatmul.mubr.f32.gmra.mxu0 %v7152_v57  ;;  %v7314_v40 = vand.u32 4294901760, %v1002_v37 }
  0x4d   :  { %477 = vmatprep.mubr.f32.mxu0 %v7044_v0 }
  0x4e   :  { %604 = vmatmul.mubr.f32.gmra.mxu1 %v197_v62 }
  0x4f   :  { %608 = vmatprep.mubr.f32.mxu1 %v7044_v0 }
  0x50   :  { %480 = vmatmul.mubr.f32.gmra.mxu0 %v7165_v63 }
  0x51   :  { %484 = vmatprep.mubr.f32.mxu0 %v7044_v0 }
  0x52   :  { %612 = vmatmul.mubr.f32.gmra.mxu1 %v207_v8 }
  0x53   :  { %616 = vmatprep.mubr.f32.mxu1 %v7044_v0 }
  0x54   :  { %487 = vmatmul.mubr.f32.gmra.mxu0 %v7182_v9 }
  0x55   :  { %491 = vmatprep.mubr.f32.mxu0 %v7044_v0 }
  0x56   :  { %620 = vmatmul.mubr.f32.gmra.mxu1 %v217_v14 }
  0x57   :  { %624 = vmatprep.mubr.f32.mxu1 %v7044_v0 }
  0x58   :  { %494 = vmatmul.mubr.f32.gmra.mxu0 %v7197_v21 }
  0x59   :  { %710 = vmatprep.mubr.f32.mxu0 %v7044_v0 }
  0x5a   :  { %628 = vmatmul.mubr.f32.gmra.mxu1 %v227_v22 }
  0x5b   :  { %828 = vmatprep.mubr.f32.mxu1 %v7044_v0 }
  0x5c   :  { %712 = vmatmul.mubr.f32.vlgmr.msra.gmra.mxu0 %v7080_v16 }
  0x5d   :  { %6292 = vmatpush3.msra.mxu0 %v7252_v6  ;;  %716 = vmatprep.mubr.f32.mxu0 %v7044_v0 }
  0x5e   :  { %830 = vmatmul.mubr.f32.vlgmr.msra.gmra.mxu1 %v7080_v16  ;;  %6293 = vmatprep.subr.mxu0 %v7044_v0  ;;  %v7329_v16 = vand.u32 4294901760, %v1009_v41 }
  0x5f   :  { %6303 = vmatpush3.msra.mxu1 %v7297_v36  ;;  %834 = vmatprep.mubr.f32.mxu1 %v7044_v0 }
  0x60   :  { %718 = vmatmul.mubr.f32.gmra.mxu0 %v7092_v20  ;;  %6304 = vmatprep.subr.mxu1 %v7044_v0 }
  0x61   :  { %722 = vmatprep.mubr.f32.mxu0 %v7044_v0  ;;  %6294 = vmatpush3.msra.mxu0 %v7262_v18 }
  0x62   :  { %836 = vmatmul.mubr.f32.gmra.mxu1 %v7092_v20  ;;  %6295 = vmatprep.subr.mxu0 %v7044_v0  ;;  %v7341_v20 = vand.u32 4294901760, %v1016_v43 }
  0x63   :  { %840 = vmatprep.mubr.f32.mxu1 %v7044_v0  ;;  %6305 = vmatpush3.msra.mxu1 %v7314_v40 }
  0x64   :  { %724 = vmatmul.mubr.f32.gmra.mxu0 %v7108_v29  ;;  %6306 = vmatprep.subr.mxu1 %v7044_v0 }
  0x65   :  { %728 = vmatprep.mubr.f32.mxu0 %v7044_v0  ;;  %6296 = vmatpush3.msra.mxu0 %v7275_v26 }
  0x66   :  { %842 = vmatmul.mubr.f32.gmra.mxu1 %v7108_v29  ;;  %6297 = vmatprep.subr.mxu0 %v7044_v0  ;;  %v51_v29 = vlaneseq }
  0x67   :  { %846 = vmatprep.mubr.f32.mxu1 %v7044_v0  ;;  %6307 = vmatpush3.msra.mxu1 %v7329_v16 }
  0x68   :  { %730 = vmatmul.mubr.f32.gmra.mxu0 %v7110_v30  ;;  %6308 = vmatprep.subr.mxu1 %v7044_v0 }
  0x69   :  { %734 = vmatprep.mubr.f32.mxu0 %v7044_v0  ;;  %6298 = vmatpush3.msra.mxu0 %v7290_v35 }
  0x6a   :  { %848 = vmatmul.mubr.f32.gmra.mxu1 %v7110_v30  ;;  %6313 = vmatprep.subr.mxu0 %v7044_v0  ;;  %v52_v30 = vshrl.u32 %v51_v29, 7 }
  0x6b   :  { %852 = vmatprep.mubr.f32.mxu1 %v7044_v0  ;;  %6309 = vmatpush3.msra.mxu1 %v7341_v20 }
  0x6c   :  { %736 = vmatmul.mubr.f32.gmra.mxu0 %v7143_v53  ;;  %6324 = vmatprep.subr.mxu1 %v7044_v0  ;;  %v53_v44 = vsub.s32 0, %v52_v30  ;;  %v57_v10 = vsub.s32 1, %v52_v30 }
  0x6d   :  { %740 = vmatprep.mubr.f32.mxu0 %v7044_v0 }
  0x6e   :  { %854 = vmatmul.mubr.f32.gmra.mxu1 %v7143_v53  ;;  %v54_v46 = vrot.slane %v40_v45, %v53_v44  ;;  %v58_v44 = vrot.slane %v40_v45, %v57_v10 }
  0x6f   :  { %858 = vmatprep.mubr.f32.mxu1 %v7044_v0 }
  0x70   :  { %742 = vmatmul.mubr.f32.gmra.mxu0 %v7148_v56 }
  0x71   :  { %746 = vmatprep.mubr.f32.mxu0 %v7044_v0 }
  0x72   :  { %860 = vmatmul.mubr.f32.gmra.mxu1 %v7148_v56 }
  0x73   :  { %864 = vmatprep.mubr.f32.mxu1 %v7044_v0 }
  0x74   :  { %748 = vmatmul.mubr.f32.gmra.mxu0 %v7167_v1 }
  0x75   :  { %752 = vmatprep.mubr.f32.mxu0 %v7044_v0 }
  0x76   :  { %866 = vmatmul.mubr.f32.gmra.mxu1 %v7167_v1 }
  0x77   :  { %870 = vmatprep.mubr.f32.mxu1 %v7044_v0 }
  0x78   :  { %754 = vmatmul.mubr.f32.gmra.mxu0 %v7184_v11 }
  0x79   :  { %6299 = vmatprep.mubr.msk.f32.mxu0 %vm7045_vm1, %v7044_v0 }
  0x7a   :  { %872 = vmatmul.mubr.f32.gmra.mxu1 %v7184_v11 }
  0x7b   :  { %6310 = vmatprep.mubr.msk.f32.mxu1 %vm7045_vm1, %v7044_v0 }
  0x7c   :  { %6300 = vmatmul.mubr.f32.vlgmr.msra.gmra.mxu0 %v7044_v0 }
  0x7d   :  { %6314 = vmatpush3.msra.mxu0 %v7260_v17  ;;  %6321 = vmatprep.mubr.msk.f32.mxu0 %vm7045_vm1, %v7044_v0 }
  0x7e   :  { %6315 = vmatprep.subr.mxu0 %v7044_v0  ;;  %6311 = vmatmul.mubr.f32.vlgmr.msra.gmra.mxu1 %v7044_v0 }
  0x7f   :  { %6316 = vmatpush3.msra.mxu0 %v7273_v25  ;;  %6325 = vmatpush3.msra.mxu1 %v7252_v6 }
  0x80   :  { %6317 = vmatprep.subr.mxu0 %v7044_v0  ;;  %6326 = vmatprep.subr.mxu1 %v7044_v0 }
  0x81   :  { %6318 = vmatpush3.msra.mxu0 %v7288_v34  ;;  %6327 = vmatpush3.msra.mxu1 %v7262_v18 }
  0x82   :  { %6319 = vmatprep.subr.mxu0 %v7044_v0  ;;  %6328 = vmatprep.subr.mxu1 %v7044_v0 }
  0x83   :  { %6320 = vmatpush3.msra.mxu0 %v7305_v39  ;;  %6329 = vmatpush3.msra.mxu1 %v7275_v26 }
  0x84   :  { %6322 = vmatmul.mubr.f32.vlgmr.msra.gmra.mxu0 %v7044_v0  ;;  %6335 = vmatprep.subr.mxu0 %v7044_v0 }
  0x85   :  { %6330 = vmatprep.subr.mxu1 %v7044_v0  ;;  %6336 = vmatpush3.msra.mxu0 %v7270_v24 }
  0x86   :  { %6331 = vmatpush3.msra.mxu1 %v7290_v35  ;;  %6332 = vmatprep.mubr.msk.f32.mxu1 %vm7045_vm1, %v7044_v0 }
  0x87   :  { %6337 = vmatprep.subr.mxu0 %v7044_v0  ;;  %6333 = vmatmul.mubr.f32.vlgmr.msra.gmra.mxu1 %v7044_v0 }
  0x88   :  { %6338 = vmatpush3.msra.mxu0 %v7285_v32  ;;  %6346 = vmatprep.subr.mxu1 %v7044_v0 }
  0x89   :  { %6339 = vmatprep.subr.mxu0 %v7044_v0  ;;  %6347 = vmatpush3.msra.mxu1 %v7252_v6 }
  0x8a   :  { %6340 = vmatpush3.msra.mxu0 %v7302_v38  ;;  %6348 = vmatprep.subr.mxu1 %v7044_v0 }
  0x8b   :  { %6341 = vmatprep.subr.mxu0 %v7044_v0  ;;  %6349 = vmatpush3.msra.mxu1 %v7262_v18 }
  0x8c   :  { %6342 = vmatpush3.msra.mxu0 %v7319_v42  ;;  %6343 = vmatprep.mubr.msk.f32.mxu0 %vm7045_vm1, %v7044_v0 }
  0x8d   :  { %6350 = vmatprep.subr.mxu1 %v7044_v0  ;;  %6344 = vmatmul.mubr.f32.vlgmr.msra.gmra.mxu0 %v7044_v0 }
  0x8e   :  { %6351 = vmatpush3.msra.mxu1 %v7275_v26  ;;  %6354 = vmatprep.mubr.msk.f32.mxu1 %vm7045_vm1, %v7044_v0 }
  0x8f   :  { %6352 = vmatprep.subr.mxu1 %v7044_v0  ;;  %6357 = vmatprep.subr.mxu0 %v7044_v0 }
  0x90   :  { %6353 = vmatpush3.msra.mxu1 %v7290_v35  ;;  %6358 = vmatpush3.msra.mxu0 %v7252_v6 }
  0x91   :  { %6355 = vmatmul.mubr.f32.vlgmr.msra.gmra.mxu1 %v7044_v0  ;;  %6368 = vmatprep.subr.mxu1 %v7044_v0 }
  0x92   :  { %6369 = vmatpush3.msra.mxu1 %v7297_v36  ;;  %6376 = vmatprep.mubr.msk.f32.mxu1 %vm7045_vm1, %v7044_v0 }
  0x93   :  { %6370 = vmatprep.subr.mxu1 %v7044_v0  ;;  %6359 = vmatprep.subr.mxu0 %v7044_v0 }
  0x94   :  { %6371 = vmatpush3.msra.mxu1 %v7314_v40  ;;  %6360 = vmatpush3.msra.mxu0 %v7262_v18 }
  0x95   :  { %6372 = vmatprep.subr.mxu1 %v7044_v0  ;;  %6361 = vmatprep.subr.mxu0 %v7044_v0 }
  0x96   :  { %6373 = vmatpush3.msra.mxu1 %v7329_v16  ;;  %6362 = vmatpush3.msra.mxu0 %v7275_v26 }
  0x97   :  { %6374 = vmatprep.subr.mxu1 %v7044_v0  ;;  %6363 = vmatprep.subr.mxu0 %v7044_v0 }
  0x98   :  { %6375 = vmatpush3.msra.mxu1 %v7341_v20  ;;  %6364 = vmatpush3.msra.mxu0 %v7290_v35 }
  0x99   :  { %6390 = vmatprep.subr.mxu1 %v7044_v0  ;;  %6365 = vmatprep.mubr.msk.f32.mxu0 %vm7045_vm1, %v7044_v0 }
  0x9a   :  { %6379 = vmatprep.subr.mxu0 %v7044_v0 }
  0xdc   :  { %v161_v47 = vpop.f32.mrf.mxu0 }
  0xdd   :  { %v162_v48 = vadd.f32 %v161_v47, %v54_v46 }
  0xde   :  { %v163_v49 = vpop.f32.mrf.mxu0  ;;  %v323_v50 = vpop.f32.mrf.mxu1 }
  0xdf   :  { %v324_v51 = vadd.f32 %v323_v50, %v162_v48 }
  0xe0   :  { %v171_v52 = vpop.f32.mrf.mxu0  ;;  %v325_v53 = vpop.f32.mrf.mxu1 }
  0xe1   :  { %v172_v54 = vadd.f32 %v171_v52, %v54_v46 }
  0xe2   :  { %v173_v55 = vpop.f32.mrf.mxu0  ;;  %v329_v56 = vpop.f32.mrf.mxu1 }
  0xe3   :  { %v330_v57 = vadd.f32 %v329_v56, %v172_v54 }
  0xe4   :  { %v181_v58 = vpop.f32.mrf.mxu0  ;;  %v331_v59 = vpop.f32.mrf.mxu1 }
  0xe5   :  { %v182_v60 = vadd.f32 %v181_v58, %v54_v46 }
  0xe6   :  { %v183_v61 = vpop.f32.mrf.mxu0  ;;  %v335_v62 = vpop.f32.mrf.mxu1 }
  0xe7   :  { %v336_v63 = vadd.f32 %v335_v62, %v182_v60 }
  0xe8   :  { %v191_v1 = vpop.f32.mrf.mxu0  ;;  %v337_v2 = vpop.f32.mrf.mxu1 }
  0xe9   :  { %v192_v3 = vadd.f32 %v191_v1, %v54_v46 }
  0xea   :  { %v193_v7 = vpop.f32.mrf.mxu0  ;;  %v341_v8 = vpop.f32.mrf.mxu1 }
  0xeb   :  { %v342_v9 = vadd.f32 %v341_v8, %v192_v3 }
  0xec   :  { %v201_v11 = vpop.f32.mrf.mxu0  ;;  %v343_v12 = vpop.f32.mrf.mxu1 }
  0xed   :  { %v202_v13 = vadd.f32 %v201_v11, %v54_v46 }
  0xee   :  { %v203_v14 = vpop.f32.mrf.mxu0  ;;  %v347_v21 = vpop.f32.mrf.mxu1 }
  0xef   :  { %v348_v4 = vadd.f32 %v347_v21, %v202_v13 }
  0xf0   :  { %v211_v15 = vpop.f32.mrf.mxu0  ;;  %v349_v22 = vpop.f32.mrf.mxu1 }
  0xf1   :  { %v212_v23 = vadd.f32 %v211_v15, %v54_v46 }
  0xf2   :  { %v213_v31 = vpop.f32.mrf.mxu0  ;;  %v353_v33 = vpop.f32.mrf.mxu1 }
  0xf3   :  { %v354_v5 = vadd.f32 %v353_v33, %v212_v23 }
  0xf4   :  { %v221_v19 = vpop.f32.mrf.mxu0  ;;  %v355_v27 = vpop.f32.mrf.mxu1 }
  0xf5   :  { %v222_v28 = vadd.f32 %v221_v19, %v54_v46 }
  0xf6   :  { %v223_v37 = vpop.f32.mrf.mxu0  ;;  %v359_v41 = vpop.f32.mrf.mxu1 }
  0xf7   :  { %v360_v43 = vadd.f32 %v359_v41, %v222_v28 }
  0xf8   :  { %v231_v47 = vpop.f32.mrf.mxu0  ;;  %v361_v48 = vpop.f32.mrf.mxu1 }
  0xf9   :  { %v232_v49 = vadd.f32 %v231_v47, %v54_v46 }
  0xfa   :  { %v233_v50 = vpop.f32.mrf.mxu0  ;;  %v365_v52 = vpop.f32.mrf.mxu1 }
  0xfb   :  { %v234_v53 = vadd.f32 %v233_v50, %v58_v44  ;;  %v366_v54 = vadd.f32 %v365_v52, %v232_v49 }
  0xfc   :  { %v446_v55 = vpop.f32.mrf.mxu0  ;;  %v367_v56 = vpop.f32.mrf.mxu1 }
  0xfd   :  { %v447_v58 = vadd.f32 %v446_v55, %v324_v51  ;;  %v368_v59 = vadd.f32 %v367_v56, %v234_v53 }
  0xfe   :  { %v448_v60 = vpop.f32.mrf.mxu0  ;;  %v573_v30 = vpop.f32.mrf.mxu1 }
  0xff   :  { %v7437_v61 = vadd.f32 %v573_v30, %v447_v58 }
 0x100   :  { %v453_v62 = vpop.f32.mrf.mxu0  ;;  %v575_v1 = vpop.f32.mrf.mxu1 }
 0x101   :  { %v454_v2 = vadd.f32 %v453_v62, %v330_v57 }
 0x102   :  { %v455_v3 = vpop.f32.mrf.mxu0  ;;  %v581_v45 = vpop.f32.mrf.mxu1 }
 0x103   :  { %v582_v7 = vadd.f32 %v581_v45, %v454_v2 }
 0x104   :  { %v460_v8 = vpop.f32.mrf.mxu0  ;;  %v583_v46 = vpop.f32.mrf.mxu1 }
 0x105   :  { %v461_v11 = vadd.f32 %v460_v8, %v336_v63 }
 0x106   :  { %v462_v12 = vpop.f32.mrf.mxu0  ;;  %v589_v13 = vpop.f32.mrf.mxu1 }
 0x107   :  { %v590_v14 = vadd.f32 %v589_v13, %v461_v11 }
 0x108   :  { %v467_v21 = vpop.f32.mrf.mxu0  ;;  %v591_v15 = vpop.f32.mrf.mxu1 }
 0x109   :  { %v468_v51 = vadd.f32 %v467_v21, %v342_v9 }
 0x10a   :  { %v469_v22 = vpop.f32.mrf.mxu0  ;;  %v597_v23 = vpop.f32.mrf.mxu1 }
 0x10b   :  { %v598_v31 = vadd.f32 %v597_v23, %v468_v51 }
 0x10c   :  { %v474_v33 = vpop.f32.mrf.mxu0  ;;  %v599_v10 = vpop.f32.mrf.mxu1 }
 0x10d   :  { %v475_v19 = vadd.f32 %v474_v33, %v348_v4 }
 0x10e   :  { %v476_v27 = vpop.f32.mrf.mxu0  ;;  %v605_v57 = vpop.f32.mrf.mxu1 }
 0x10f   :  { %v606_v28 = vadd.f32 %v605_v57, %v475_v19 }
 0x110   :  { %v481_v37 = vpop.f32.mrf.mxu0  ;;  %v607_v41 = vpop.f32.mrf.mxu1 }
 0x111   :  { %v482_v44 = vadd.f32 %v481_v37, %v354_v5 }
 0x112   :  { %v483_v47 = vpop.f32.mrf.mxu0  ;;  %v613_v63 = vpop.f32.mrf.mxu1 }
 0x113   :  { %v614_v48 = vadd.f32 %v613_v63, %v482_v44 }
 0x114   :  { %v488_v49 = vpop.f32.mrf.mxu0  ;;  %v615_v50 = vpop.f32.mrf.mxu1 }
 0x115   :  { %v489_v52 = vadd.f32 %v488_v49, %v360_v43 }
 0x116   :  { %v490_v53 = vpop.f32.mrf.mxu0  ;;  %v621_v9 = vpop.f32.mrf.mxu1 }
 0x117   :  { %v622_v55 = vadd.f32 %v621_v9, %v489_v52 }
 0x118   :  { %v495_v56 = vpop.f32.mrf.mxu0  ;;  %v623_v58 = vpop.f32.mrf.mxu1 }
 0x119   :  { %v496_v60 = vadd.f32 %v495_v56, %v366_v54 }
 0x11a   :  { %v497_v30 = vpop.f32.mrf.mxu0  ;;  %v629_v4 = vpop.f32.mrf.mxu1 }
 0x11b   :  { %v498_v62 = vadd.f32 %v497_v30, %v368_v59  ;;  %v630_v1 = vadd.f32 %v629_v4, %v496_v60 }
 0x11c   :  { %v7439_v2 = vpop.f32.mrf.mxu0  ;;  %v631_v3 = vpop.f32.mrf.mxu1 }
 0x11d   :  { %v632_v5 = vadd.f32 %v631_v3, %v498_v62 }
 0x11e   :  { %v715_v45 = vpop.f32.mrf.mxu0  ;;  %v7441_v8 = vpop.f32.mrf.mxu1 }
 0x120   :  { %v719_v46 = vpop.f32.mrf.mxu0  ;;  %v833_v11 = vpop.f32.mrf.mxu1 }
 0x121   :  { %v720_v43 = vadd.f32 %v719_v46, %v582_v7 }
 0x122   :  { %v721_v12 = vpop.f32.mrf.mxu0  ;;  %v837_v13 = vpop.f32.mrf.mxu1 }
 0x123   :  { %v7443_v21 = vadd.f32 %v837_v13, %v720_v43 }
 0x124   :  { %v725_v15 = vpop.f32.mrf.mxu0  ;;  %v839_v54 = vpop.f32.mrf.mxu1 }
 0x125   :  { %v726_v51 = vadd.f32 %v725_v15, %v590_v14 }
 0x126   :  { %v727_v22 = vpop.f32.mrf.mxu0  ;;  %v843_v59 = vpop.f32.mrf.mxu1 }
 0x127   :  { %v7445_v23 = vadd.f32 %v843_v59, %v726_v51 }
 0x128   :  { %v731_v33 = vpop.f32.mrf.mxu0  ;;  %v845_v10 = vpop.f32.mrf.mxu1 }
 0x129   :  { %v732_v19 = vadd.f32 %v731_v33, %v598_v31 }
 0x12a   :  { %v733_v27 = vpop.f32.mrf.mxu0  ;;  %v849_v57 = vpop.f32.mrf.mxu1 }
 0x12b   :  { %v7447_v37 = vadd.f32 %v849_v57, %v732_v19 }
 0x12c   :  { %v737_v41 = vpop.f32.mrf.mxu0  ;;  %v851_v7 = vpop.f32.mrf.mxu1 }
 0x12d   :  { %v738_v44 = vadd.f32 %v737_v41, %v606_v28 }
 0x12e   :  { %v739_v47 = vpop.f32.mrf.mxu0  ;;  %v855_v63 = vpop.f32.mrf.mxu1 }
 0x12f   :  { %v7449_v49 = vadd.f32 %v855_v63, %v738_v44 }
 0x130   :  { %v743_v50 = vpop.f32.mrf.mxu0  ;;  %v857_v14 = vpop.f32.mrf.mxu1 }
 0x131   :  { %v744_v52 = vadd.f32 %v743_v50, %v614_v48 }
 0x132   :  { %v745_v53 = vpop.f32.mrf.mxu0  ;;  %v861_v9 = vpop.f32.mrf.mxu1 }
 0x133   :  { %v7451_v56 = vadd.f32 %v861_v9, %v744_v52  ;;  %v7046_v53 = vmov 0.5  }
 0x134   :  { %v749_v58 = vpop.f32.mrf.mxu0  ;;  %v863_v31 = vpop.f32.mrf.mxu1 }
 0x135   :  { %v750_v60 = vadd.f32 %v749_v58, %v622_v55 }
 0x136   :  { %v751_v30 = vpop.f32.mrf.mxu0  ;;  %v867_v4 = vpop.f32.mrf.mxu1 }
 0x137   :  { %v7453_v62 = vadd.f32 %v867_v4, %v750_v60 }
 0x138   :  { %v755_v3 = vpop.f32.mrf.mxu0  ;;  %v869_v28 = vpop.f32.mrf.mxu1 }
 0x139   :  { %v756_v45 = vadd.f32 %v755_v3, %v630_v1  ;;  %v879_v1 = vand.u32 127, %v51_v29 }
 0x13a   :  { %v757_v46 = vpop.f32.mrf.mxu0  ;;  %v873_v11 = vpop.f32.mrf.mxu1 }
 0x13b   :  { %v758_v43 = vadd.f32 %v757_v46, %v632_v5  ;;  %v7455_v12 = vadd.f32 %v873_v11, %v756_v45  ;;  %v714_v5 = vadd.f32 %v7439_v2, %v7437_v61  ;;  %vm880_vm2 = vcmp.ge.s32.totalorder %v879_v1, 64 }
 0x13c   :  { %v963_v48 = vpop.f32.mrf.mxu0  ;;  %v875_v13 = vpop.f32.mrf.mxu1  ;;  %vm881_vm3 = vcmp.lt.s32.totalorder %v879_v1, 96 }
 0x13d   :  { %v7457_v15 = vadd.f32 %v875_v13, %v758_v43  ;;  %vm882_vm4 = vmand %vm880_vm2, %vm881_vm3  ;;  %v832_v63 = vadd.f32 %v7441_v8, %v714_v5 }
 0x13e   :  { %v6301_v54 = vpop.f32.mrf.mxu0  ;;  %v1054_v51 = vpop.f32.mrf.mxu1  ;;  %v7463_v9 = vsel %vm882_vm4, 1.0, %v7046_v53 }
 0x13f   :  { %v1055_v59 = vadd.f32 %v1054_v51, %v963_v48 }
 0x140   :  { %v6312_v22 = vpop.f32.mrf.mxu1 }
 0x144   :  { %v1134_v55 = vpop.f32.mrf.mxu0 }
 0x145   :  { %v1135_v19 = vadd.f32 %v1134_v55, %v1055_v59 }
 0x146   :  { %v6323_v33 = vpop.f32.mrf.mxu0 }
 0x147   :  { %v1211_v10 = vpop.f32.mrf.mxu1 }
 0x148   :  { %v1212_v57 = vadd.f32 %v1211_v10, %v1135_v19 }
 0x149   :  { %v6334_v27 = vpop.f32.mrf.mxu1 }
 0x14d   :  { %v1294_v41 = vpop.f32.mrf.mxu0 }
 0x14e   :  { %v1295_v7 = vadd.f32 %v1294_v41, %v1212_v57 }
 0x14f   :  { %v6345_v44 = vpop.f32.mrf.mxu0 }
 0x151   :  { %v1369_v47 = vpop.f32.mrf.mxu1 }
 0x152   :  { %v1370_v50 = vadd.f32 %v1369_v47, %v1295_v7 }
 0x153   :  { %v6356_v14 = vpop.f32.mrf.mxu1 }
 0x154   :  { %v1373_v52 = vadd.f32 %v1370_v50, %v832_v63 }
 0x156   :  { %v1374_v29 = vmul.f32 %v1373_v52, %v7463_v9 }
 0x158   :  { %6961 = vtanh.f32 %v1374_v29 }
 0x165   :  { %v6962_v58 = vpop.eup %6961 }
 0x166   :  { %1380 = vrot.lane.b32.xlu0 %v6962_v58, %s7047_s0  ;;  %v1376_v61 = vmul.f32 0.5, %v6962_v58 }
 0x168   :  { %v1377_v2 = vadd.f32 0.5, %v1376_v61 }
 0x16a   :  { %v1378_v8 = vmul.f32 0.0, %v1377_v2 }
 0x1d8   :  { %v1381_v31 = vpop.permute.xlu0 %1380 }
 0x1d9   :  { %v1383_v60 = vmul.f32 %v1381_v31, %v1377_v2 }
 0x1db   :  { %1385 = vrot.lane.b32.xlu0 %v1383_v60, %s7048_s13 }
 0x24d   :  { %v1386_v30 = vpop.permute.xlu0 %1385 }
 0x24e   :  { %v7468_v4 = vadd.f32 %v1386_v30, %v1378_v8 }
 0x250   :  { %6963 = vtanh.f32 %v7468_v4 }
 0x25d   :  { %v6964_v3 = vpop.eup %6963 }
 0x25e   :  { %1391 = vrot.lane.b32.xlu1 %v6964_v3, %s7047_s0 }
 0x2d0   :  { %v1392_v28 = vpop.permute.xlu1 %1391 }
 0x2d1   :  { %v1394_v45 = vmul.f32 %v1392_v28, %v1377_v2 }
 0x2d3   :  { %1396 = vrot.lane.b32.xlu1 %v1394_v45, %s7048_s13 }
 0x345   :  { %v1397_v46 = vpop.permute.xlu1 %1396 }
 0x346   :  { %v1398_v11 = vsel %vm884_vm5, %v1397_v46, 0 }
 0x347   :  { %v1469_v43 = vand.u32 4294901760, %v1398_v11 }
 0x349   :  { %v1470_v48 = vsub.f32 %v1398_v11, %v1469_v43  ;;  %6377 = vmatmul.mubr.f32.vlgmr.msra.gmra.mxu1 %v1469_v43 }
 0x34a   :  { %6391 = vmatpush3.msra.mxu1 %v7252_v6  ;;  %6398 = vmatprep.mubr.msk.f32.mxu1 %vm7045_vm1, %v7044_v0 }
 0x34b   :  { %v1471_v13 = vand.u32 4294901760, %v1470_v48  ;;  %6392 = vmatprep.subr.mxu1 %v7044_v0 }
 0x34c   :  { %6393 = vmatpush3.msra.mxu1 %v7262_v18 }
 0x34d   :  { %v1472_v54 = vsub.f32 %v1470_v48, %v1471_v13  ;;  %6394 = vmatprep.subr.mxu1 %v7044_v0 }
 0x34e   :  { %6395 = vmatpush3.msra.mxu1 %v7275_v26 }
 0x34f   :  { %v1473_v51 = vand.u32 4294901760, %v1472_v54  ;;  %6396 = vmatprep.subr.mxu1 %v7044_v0 }
 0x350   :  { %6397 = vmatpush3.msra.mxu1 %v7290_v35 }
 0x351   :  { %6399 = vmatmul.mubr.f32.vlgmr.msra.gmra.mxu1 %v1471_v13  ;;  %6412 = vmatprep.subr.mxu1 %v7044_v0 }
 0x352   :  { %6366 = vmatmul.mubr.f32.vlgmr.msra.gmra.mxu0 %v1473_v51  ;;  %6413 = vmatpush3.msra.mxu1 %v7252_v6 }
 0x353   :  { %6380 = vmatpush3.msra.mxu0 %v7260_v17  ;;  %6414 = vmatprep.subr.mxu1 %v7044_v0 }
 0x354   :  { %6381 = vmatprep.subr.mxu0 %v7044_v0  ;;  %6415 = vmatpush3.msra.mxu1 %v7262_v18 }
 0x355   :  { %6382 = vmatpush3.msra.mxu0 %v7273_v25  ;;  %6416 = vmatprep.subr.mxu1 %v7044_v0 }
 0x356   :  { %6383 = vmatprep.subr.mxu0 %v7044_v0  ;;  %6417 = vmatpush3.msra.mxu1 %v7275_v26 }
 0x357   :  { %6384 = vmatpush3.msra.mxu0 %v7288_v34  ;;  %6418 = vmatprep.subr.mxu1 %v7044_v0 }
 0x358   :  { %6385 = vmatprep.subr.mxu0 %v7044_v0  ;;  %6387 = vmatprep.mubr.msk.f32.mxu0 %vm7045_vm1, %v7044_v0 }
 0x359   :  { %6386 = vmatpush3.msra.mxu0 %v7305_v39  ;;  %6419 = vmatpush3.msra.mxu1 %v7290_v35 }
 0x35a   :  { %6420 = vmatprep.mubr.msk.f32.mxu1 %vm7045_vm1, %v7044_v0  ;;  %6388 = vmatmul.mubr.f32.vlgmr.msra.gmra.mxu0 %v1470_v48 }
 0x35b   :  { %6401 = vmatprep.subr.mxu0 %v7044_v0  ;;  %6421 = vmatmul.mubr.f32.vlgmr.msra.gmra.mxu1 %v1469_v43 }
 0x35c   :  { %6402 = vmatpush3.msra.mxu0 %v7270_v24  ;;  %6409 = vmatprep.mubr.msk.f32.mxu0 %vm7045_vm1, %v7044_v0 }
 0x35d   :  { %6403 = vmatprep.subr.mxu0 %v7044_v0  ;;  %6434 = vmatprep.subr.mxu1 %v7044_v0 }
 0x35e   :  { %6404 = vmatpush3.msra.mxu0 %v7285_v32  ;;  %6435 = vmatpush3.msra.mxu1 %v7297_v36 }
 0x35f   :  { %6405 = vmatprep.subr.mxu0 %v7044_v0  ;;  %6436 = vmatprep.subr.mxu1 %v7044_v0 }
 0x360   :  { %6406 = vmatpush3.msra.mxu0 %v7302_v38  ;;  %6437 = vmatpush3.msra.mxu1 %v7314_v40 }
 0x361   :  { %6407 = vmatprep.subr.mxu0 %v7044_v0  ;;  %6438 = vmatprep.subr.mxu1 %v7044_v0 }
 0x362   :  { %6408 = vmatpush3.msra.mxu0 %v7319_v42  ;;  %6439 = vmatpush3.msra.mxu1 %v7329_v16 }
 0x363   :  { %6410 = vmatmul.mubr.f32.vlgmr.msra.gmra.mxu0 %v1469_v43  ;;  %6440 = vmatprep.subr.mxu1 %v7044_v0 }
 0x364   :  { %6441 = vmatpush3.msra.mxu1 %v7341_v20  ;;  %6423 = vmatprep.subr.mxu0 %v7044_v0 }
 0x365   :  { %6442 = vmatprep.mubr.msk.f32.mxu1 %vm7045_vm1, %v7044_v0  ;;  %6456 = vmatprep.subr.mxu1 %v7044_v0 }
 0x366   :  { %6424 = vmatpush3.msra.mxu0 %v7252_v6  ;;  %6431 = vmatprep.mubr.msk.f32.mxu0 %vm7045_vm1, %v7044_v0 }
 0x367   :  { %6425 = vmatprep.subr.mxu0 %v7044_v0 }
 0x368   :  { %6426 = vmatpush3.msra.mxu0 %v7262_v18 }
 0x369   :  { %6427 = vmatprep.subr.mxu0 %v7044_v0 }
 0x36a   :  { %6428 = vmatpush3.msra.mxu0 %v7275_v26 }
 0x36b   :  { %6429 = vmatprep.subr.mxu0 %v7044_v0 }
 0x36c   :  { %6430 = vmatpush3.msra.mxu0 %v7290_v35 }
 0x36d   :  { %6445 = vmatprep.subr.mxu0 %v7044_v0 }
 0x409   :  { %v1566_v22 = vpop.f32.mrf.mxu1 }
 0x40b   :  { %v6378_v55 = vpop.f32.mrf.mxu1 }
 0x411   :  { %v1723_v59 = vpop.f32.mrf.mxu1 }
 0x412   :  { %v1475_v33 = vpop.f32.mrf.mxu0 }
 0x413   :  { %v6400_v10 = vpop.f32.mrf.mxu1  ;;  %v1567_v57 = vadd.f32 %v1566_v22, %v1475_v33 }
 0x414   :  { %v6367_v19 = vpop.f32.mrf.mxu0 }
 0x41a   :  { %v1646_v27 = vpop.f32.mrf.mxu0 }
 0x41b   :  { %v1881_v1 = vpop.f32.mrf.mxu1  ;;  %v1647_v7 = vadd.f32 %v1646_v27, %v1567_v57 }
 0x41c   :  { %v6389_v41 = vpop.f32.mrf.mxu0 }
 0x41d   :  { %v6422_v5 = vpop.f32.mrf.mxu1  ;;  %v1724_v44 = vadd.f32 %v1723_v59, %v1647_v7 }
 0x423   :  { %v1806_v47 = vpop.f32.mrf.mxu0 }
 0x424   :  { %v1807_v63 = vadd.f32 %v1806_v47, %v1724_v44 }
 0x425   :  { %v6411_v50 = vpop.f32.mrf.mxu0 }
 0x426   :  { %v1882_v14 = vadd.f32 %v1881_v1, %v1807_v63 }
 0x428   :  { %v1885_v52 = vadd.f32 %v1882_v14, %v7443_v21 }
 0x42a   :  { %v1886_v53 = vmul.f32 %v1885_v52, %v7463_v9 }
 0x42c   :  { %6965 = vtanh.f32 %v1886_v53 }
 0x439   :  { %v6966_v29 = vpop.eup %6965 }
 0x43a   :  { %1892 = vrot.lane.b32.xlu0 %v6966_v29, %s7047_s0  ;;  %v1888_v58 = vmul.f32 0.5, %v6966_v29 }
 0x43c   :  { %v1889_v61 = vadd.f32 0.5, %v1888_v58 }
 0x43e   :  { %v1890_v60 = vmul.f32 %v1889_v61, %v7468_v4 }
 0x4ac   :  { %v1893_v2 = vpop.permute.xlu0 %1892 }
 0x4ad   :  { %v1895_v31 = vmul.f32 %v1893_v2, %v1889_v61 }
 0x4af   :  { %1897 = vrot.lane.b32.xlu1 %v1895_v31, %s7048_s13 }
 0x521   :  { %v1898_v8 = vpop.permute.xlu1 %1897 }
 0x522   :  { %v7539_v30 = vadd.f32 %v1898_v8, %v1890_v60 }
 0x524   :  { %6967 = vtanh.f32 %v7539_v30 }
 0x531   :  { %v6968_v21 = vpop.eup %6967 }
 0x532   :  { %1903 = vrot.lane.b32.xlu0 %v6968_v21, %s7047_s0 }
 0x5a4   :  { %v1904_v3 = vpop.permute.xlu0 %1903 }
 0x5a5   :  { %v1906_v28 = vmul.f32 %v1904_v3, %v1889_v61 }
 0x5a7   :  { %1908 = vrot.lane.b32.xlu1 %v1906_v28, %s7048_s13 }
 0x619   :  { %v1909_v45 = vpop.permute.xlu1 %1908 }
 0x61a   :  { %v1910_v46 = vsel %vm884_vm5, %v1909_v45, 0 }
 0x61b   :  { %v1981_v11 = vand.u32 4294901760, %v1910_v46 }
 0x61d   :  { %v1982_v43 = vsub.f32 %v1910_v46, %v1981_v11  ;;  %6443 = vmatmul.mubr.f32.vlgmr.msra.gmra.mxu1 %v1981_v11 }
 0x61e   :  { %6457 = vmatpush3.msra.mxu1 %v7252_v6  ;;  %6464 = vmatprep.mubr.msk.f32.mxu1 %vm7045_vm1, %v7044_v0 }
 0x61f   :  { %v1983_v4 = vand.u32 4294901760, %v1982_v43  ;;  %6458 = vmatprep.subr.mxu1 %v7044_v0 }
 0x620   :  { %6459 = vmatpush3.msra.mxu1 %v7262_v18 }
 0x621   :  { %v1984_v48 = vsub.f32 %v1982_v43, %v1983_v4  ;;  %6460 = vmatprep.subr.mxu1 %v7044_v0 }
 0x622   :  { %6461 = vmatpush3.msra.mxu1 %v7275_v26 }
 0x623   :  { %v1985_v13 = vand.u32 4294901760, %v1984_v48  ;;  %6462 = vmatprep.subr.mxu1 %v7044_v0 }
 0x624   :  { %6463 = vmatpush3.msra.mxu1 %v7290_v35 }
 0x625   :  { %6465 = vmatmul.mubr.f32.vlgmr.msra.gmra.mxu1 %v1983_v4  ;;  %6478 = vmatprep.subr.mxu1 %v7044_v0 }
 0x626   :  { %6432 = vmatmul.mubr.f32.vlgmr.msra.gmra.mxu0 %v1985_v13  ;;  %6479 = vmatpush3.msra.mxu1 %v7252_v6 }
 0x627   :  { %6446 = vmatpush3.msra.mxu0 %v7260_v17  ;;  %6480 = vmatprep.subr.mxu1 %v7044_v0 }
 0x628   :  { %6447 = vmatprep.subr.mxu0 %v7044_v0  ;;  %6481 = vmatpush3.msra.mxu1 %v7262_v18 }
 0x629   :  { %6448 = vmatpush3.msra.mxu0 %v7273_v25  ;;  %6482 = vmatprep.subr.mxu1 %v7044_v0 }
 0x62a   :  { %6449 = vmatprep.subr.mxu0 %v7044_v0  ;;  %6483 = vmatpush3.msra.mxu1 %v7275_v26 }
 0x62b   :  { %6450 = vmatpush3.msra.mxu0 %v7288_v34  ;;  %6484 = vmatprep.subr.mxu1 %v7044_v0 }
 0x62c   :  { %6451 = vmatprep.subr.mxu0 %v7044_v0  ;;  %6453 = vmatprep.mubr.msk.f32.mxu0 %vm7045_vm1, %v7044_v0 }
 0x62d   :  { %6452 = vmatpush3.msra.mxu0 %v7305_v39  ;;  %6485 = vmatpush3.msra.mxu1 %v7290_v35 }
 0x62e   :  { %6486 = vmatprep.mubr.msk.f32.mxu1 %vm7045_vm1, %v7044_v0  ;;  %6454 = vmatmul.mubr.f32.vlgmr.msra.gmra.mxu0 %v1982_v43 }
 0x62f   :  { %6467 = vmatprep.subr.mxu0 %v7044_v0  ;;  %6487 = vmatmul.mubr.f32.vlgmr.msra.gmra.mxu1 %v1981_v11 }
 0x630   :  { %6468 = vmatpush3.msra.mxu0 %v7270_v24  ;;  %6475 = vmatprep.mubr.msk.f32.mxu0 %vm7045_vm1, %v7044_v0 }
 0x631   :  { %6469 = vmatprep.subr.mxu0 %v7044_v0  ;;  %6500 = vmatprep.subr.mxu1 %v7044_v0 }
 0x632   :  { %6470 = vmatpush3.msra.mxu0 %v7285_v32  ;;  %6501 = vmatpush3.msra.mxu1 %v7297_v36 }
 0x633   :  { %6471 = vmatprep.subr.mxu0 %v7044_v0  ;;  %6502 = vmatprep.subr.mxu1 %v7044_v0 }
 0x634   :  { %6472 = vmatpush3.msra.mxu0 %v7302_v38  ;;  %6503 = vmatpush3.msra.mxu1 %v7314_v40 }
 0x635   :  { %6473 = vmatprep.subr.mxu0 %v7044_v0  ;;  %6504 = vmatprep.subr.mxu1 %v7044_v0 }
 0x636   :  { %6474 = vmatpush3.msra.mxu0 %v7319_v42  ;;  %6505 = vmatpush3.msra.mxu1 %v7329_v16 }
 0x637   :  { %6476 = vmatmul.mubr.f32.vlgmr.msra.gmra.mxu0 %v1981_v11  ;;  %6506 = vmatprep.subr.mxu1 %v7044_v0 }
 0x638   :  { %6507 = vmatpush3.msra.mxu1 %v7341_v20  ;;  %6489 = vmatprep.subr.mxu0 %v7044_v0 }
 0x639   :  { %6508 = vmatprep.mubr.msk.f32.mxu1 %vm7045_vm1, %v7044_v0  ;;  %6522 = vmatprep.subr.mxu1 %v7044_v0 }
 0x63a   :  { %6490 = vmatpush3.msra.mxu0 %v7252_v6  ;;  %6497 = vmatprep.mubr.msk.f32.mxu0 %vm7045_vm1, %v7044_v0 }
 0x63b   :  { %6491 = vmatprep.subr.mxu0 %v7044_v0 }
 0x63c   :  { %6492 = vmatpush3.msra.mxu0 %v7262_v18 }
 0x63d   :  { %6493 = vmatprep.subr.mxu0 %v7044_v0 }
 0x63e   :  { %6494 = vmatpush3.msra.mxu0 %v7275_v26 }
 0x63f   :  { %6495 = vmatprep.subr.mxu0 %v7044_v0 }
 0x640   :  { %6496 = vmatpush3.msra.mxu0 %v7290_v35 }
 0x641   :  { %6511 = vmatprep.subr.mxu0 %v7044_v0 }
 0x6dd   :  { %v2078_v54 = vpop.f32.mrf.mxu1 }
 0x6df   :  { %v6444_v51 = vpop.f32.mrf.mxu1 }
 0x6e5   :  { %v2235_v22 = vpop.f32.mrf.mxu1 }
 0x6e6   :  { %v1987_v55 = vpop.f32.mrf.mxu0 }
 0x6e7   :  { %v6466_v59 = vpop.f32.mrf.mxu1  ;;  %v2079_v27 = vadd.f32 %v2078_v54, %v1987_v55 }
 0x6e8   :  { %v6433_v33 = vpop.f32.mrf.mxu0 }
 0x6ee   :  { %v2158_v10 = vpop.f32.mrf.mxu0 }
 0x6ef   :  { %v2393_v19 = vpop.f32.mrf.mxu1  ;;  %v2159_v41 = vadd.f32 %v2158_v10, %v2079_v27 }
 0x6f0   :  { %v6455_v1 = vpop.f32.mrf.mxu0 }
 0x6f1   :  { %v6488_v57 = vpop.f32.mrf.mxu1  ;;  %v2236_v5 = vadd.f32 %v2235_v22, %v2159_v41 }
 0x6f7   :  { %v2318_v7 = vpop.f32.mrf.mxu0 }
 0x6f8   :  { %v2319_v44 = vadd.f32 %v2318_v7, %v2236_v5 }
 0x6f9   :  { %v6477_v47 = vpop.f32.mrf.mxu0 }
 0x6fa   :  { %v2394_v63 = vadd.f32 %v2393_v19, %v2319_v44 }
 0x6fc   :  { %v2397_v50 = vadd.f32 %v2394_v63, %v7445_v23 }
 0x6fe   :  { %v2398_v14 = vmul.f32 %v2397_v50, %v7463_v9 }
 0x700   :  { %6969 = vtanh.f32 %v2398_v14 }
 0x70d   :  { %v6970_v52 = vpop.eup %6969 }
 0x70e   :  { %2404 = vrot.lane.b32.xlu0 %v6970_v52, %s7047_s0  ;;  %v2400_v53 = vmul.f32 0.5, %v6970_v52 }
 0x710   :  { %v2401_v29 = vadd.f32 0.5, %v2400_v53 }
 0x712   :  { %v2402_v2 = vmul.f32 %v2401_v29, %v7539_v30 }
 0x780   :  { %v2405_v58 = vpop.permute.xlu0 %2404 }
 0x781   :  { %v2407_v61 = vmul.f32 %v2405_v58, %v2401_v29 }
 0x783   :  { %2409 = vrot.lane.b32.xlu1 %v2407_v61, %s7048_s13 }
 0x7f5   :  { %v2410_v31 = vpop.permute.xlu1 %2409 }
 0x7f6   :  { %v7610_v60 = vadd.f32 %v2410_v31, %v2402_v2 }
 0x7f8   :  { %6971 = vtanh.f32 %v7610_v60 }
 0x805   :  { %v6972_v23 = vpop.eup %6971 }
 0x806   :  { %2415 = vrot.lane.b32.xlu0 %v6972_v23, %s7047_s0 }
 0x878   :  { %v2416_v8 = vpop.permute.xlu0 %2415 }
 0x879   :  { %v2418_v21 = vmul.f32 %v2416_v8, %v2401_v29 }
 0x87b   :  { %2420 = vrot.lane.b32.xlu1 %v2418_v21, %s7048_s13 }
 0x8ed   :  { %v2421_v3 = vpop.permute.xlu1 %2420 }
 0x8ee   :  { %v2422_v28 = vsel %vm884_vm5, %v2421_v3, 0 }
 0x8ef   :  { %v2493_v45 = vand.u32 4294901760, %v2422_v28 }
 0x8f1   :  { %v2494_v46 = vsub.f32 %v2422_v28, %v2493_v45  ;;  %6509 = vmatmul.mubr.f32.vlgmr.msra.gmra.mxu1 %v2493_v45 }
 0x8f2   :  { %6523 = vmatpush3.msra.mxu1 %v7252_v6  ;;  %6530 = vmatprep.mubr.msk.f32.mxu1 %vm7045_vm1, %v7044_v0 }
 0x8f3   :  { %v2495_v30 = vand.u32 4294901760, %v2494_v46  ;;  %6524 = vmatprep.subr.mxu1 %v7044_v0 }
 0x8f4   :  { %6525 = vmatpush3.msra.mxu1 %v7262_v18 }
 0x8f5   :  { %v2496_v11 = vsub.f32 %v2494_v46, %v2495_v30  ;;  %6526 = vmatprep.subr.mxu1 %v7044_v0 }
 0x8f6   :  { %6527 = vmatpush3.msra.mxu1 %v7275_v26 }
 0x8f7   :  { %v2497_v43 = vand.u32 4294901760, %v2496_v11  ;;  %6528 = vmatprep.subr.mxu1 %v7044_v0 }
 0x8f8   :  { %6529 = vmatpush3.msra.mxu1 %v7290_v35 }
 0x8f9   :  { %6531 = vmatmul.mubr.f32.vlgmr.msra.gmra.mxu1 %v2495_v30  ;;  %6544 = vmatprep.subr.mxu1 %v7044_v0 }
 0x8fa   :  { %6498 = vmatmul.mubr.f32.vlgmr.msra.gmra.mxu0 %v2497_v43  ;;  %6545 = vmatpush3.msra.mxu1 %v7252_v6 }
 0x8fb   :  { %6512 = vmatpush3.msra.mxu0 %v7260_v17  ;;  %6546 = vmatprep.subr.mxu1 %v7044_v0 }
 0x8fc   :  { %6513 = vmatprep.subr.mxu0 %v7044_v0  ;;  %6547 = vmatpush3.msra.mxu1 %v7262_v18 }
 0x8fd   :  { %6514 = vmatpush3.msra.mxu0 %v7273_v25  ;;  %6548 = vmatprep.subr.mxu1 %v7044_v0 }
 0x8fe   :  { %6515 = vmatprep.subr.mxu0 %v7044_v0  ;;  %6549 = vmatpush3.msra.mxu1 %v7275_v26 }
 0x8ff   :  { %6516 = vmatpush3.msra.mxu0 %v7288_v34  ;;  %6550 = vmatprep.subr.mxu1 %v7044_v0 }
 0x900   :  { %6517 = vmatprep.subr.mxu0 %v7044_v0  ;;  %6519 = vmatprep.mubr.msk.f32.mxu0 %vm7045_vm1, %v7044_v0 }
 0x901   :  { %6518 = vmatpush3.msra.mxu0 %v7305_v39  ;;  %6551 = vmatpush3.msra.mxu1 %v7290_v35 }
 0x902   :  { %6552 = vmatprep.mubr.msk.f32.mxu1 %vm7045_vm1, %v7044_v0  ;;  %6520 = vmatmul.mubr.f32.vlgmr.msra.gmra.mxu0 %v2494_v46 }
 0x903   :  { %6533 = vmatprep.subr.mxu0 %v7044_v0  ;;  %6553 = vmatmul.mubr.f32.vlgmr.msra.gmra.mxu1 %v2493_v45 }
 0x904   :  { %6534 = vmatpush3.msra.mxu0 %v7270_v24  ;;  %6541 = vmatprep.mubr.msk.f32.mxu0 %vm7045_vm1, %v7044_v0 }
 0x905   :  { %6535 = vmatprep.subr.mxu0 %v7044_v0  ;;  %6566 = vmatprep.subr.mxu1 %v7044_v0 }
 0x906   :  { %6536 = vmatpush3.msra.mxu0 %v7285_v32  ;;  %6567 = vmatpush3.msra.mxu1 %v7297_v36 }
 0x907   :  { %6537 = vmatprep.subr.mxu0 %v7044_v0  ;;  %6568 = vmatprep.subr.mxu1 %v7044_v0 }
 0x908   :  { %6538 = vmatpush3.msra.mxu0 %v7302_v38  ;;  %6569 = vmatpush3.msra.mxu1 %v7314_v40 }
 0x909   :  { %6539 = vmatprep.subr.mxu0 %v7044_v0  ;;  %6570 = vmatprep.subr.mxu1 %v7044_v0 }
 0x90a   :  { %6540 = vmatpush3.msra.mxu0 %v7319_v42  ;;  %6571 = vmatpush3.msra.mxu1 %v7329_v16 }
 0x90b   :  { %6542 = vmatmul.mubr.f32.vlgmr.msra.gmra.mxu0 %v2493_v45  ;;  %6572 = vmatprep.subr.mxu1 %v7044_v0 }
 0x90c   :  { %6573 = vmatpush3.msra.mxu1 %v7341_v20  ;;  %6555 = vmatprep.subr.mxu0 %v7044_v0 }
 0x90d   :  { %6574 = vmatprep.mubr.msk.f32.mxu1 %vm7045_vm1, %v7044_v0  ;;  %6588 = vmatprep.subr.mxu1 %v7044_v0 }
 0x90e   :  { %6556 = vmatpush3.msra.mxu0 %v7252_v6  ;;  %6563 = vmatprep.mubr.msk.f32.mxu0 %vm7045_vm1, %v7044_v0 }
 0x90f   :  { %6557 = vmatprep.subr.mxu0 %v7044_v0 }
 0x910   :  { %6558 = vmatpush3.msra.mxu0 %v7262_v18 }
 0x911   :  { %6559 = vmatprep.subr.mxu0 %v7044_v0 }
 0x912   :  { %6560 = vmatpush3.msra.mxu0 %v7275_v26 }
 0x913   :  { %6561 = vmatprep.subr.mxu0 %v7044_v0 }
 0x914   :  { %6562 = vmatpush3.msra.mxu0 %v7290_v35 }
 0x915   :  { %6577 = vmatprep.subr.mxu0 %v7044_v0 }
 0x9b1   :  { %v2590_v4 = vpop.f32.mrf.mxu1 }
 0x9b3   :  { %v6510_v48 = vpop.f32.mrf.mxu1 }
 0x9b9   :  { %v2747_v13 = vpop.f32.mrf.mxu1 }
 0x9ba   :  { %v2499_v54 = vpop.f32.mrf.mxu0 }
 0x9bb   :  { %v6532_v51 = vpop.f32.mrf.mxu1  ;;  %v2591_v33 = vadd.f32 %v2590_v4, %v2499_v54 }
 0x9bc   :  { %v6499_v22 = vpop.f32.mrf.mxu0 }
 0x9c2   :  { %v2670_v55 = vpop.f32.mrf.mxu0 }
 0x9c3   :  { %v2905_v59 = vpop.f32.mrf.mxu1  ;;  %v2671_v27 = vadd.f32 %v2670_v55, %v2591_v33 }
 0x9c4   :  { %v6521_v10 = vpop.f32.mrf.mxu0 }
 0x9c5   :  { %v6554_v19 = vpop.f32.mrf.mxu1  ;;  %v2748_v1 = vadd.f32 %v2747_v13, %v2671_v27 }
 0x9cb   :  { %v2830_v57 = vpop.f32.mrf.mxu0 }
 0x9cc   :  { %v2831_v41 = vadd.f32 %v2830_v57, %v2748_v1 }
 0x9cd   :  { %v6543_v5 = vpop.f32.mrf.mxu0 }
 0x9ce   :  { %v2906_v7 = vadd.f32 %v2905_v59, %v2831_v41 }
 0x9d0   :  { %v2909_v44 = vadd.f32 %v2906_v7, %v7447_v37 }
 0x9d2   :  { %v2910_v47 = vmul.f32 %v2909_v44, %v7463_v9 }
 0x9d4   :  { %6973 = vtanh.f32 %v2910_v47 }
 0x9e1   :  { %v6974_v63 = vpop.eup %6973 }
 0x9e2   :  { %2916 = vrot.lane.b32.xlu0 %v6974_v63, %s7047_s0  ;;  %v2912_v50 = vmul.f32 0.5, %v6974_v63 }
 0x9e4   :  { %v2913_v14 = vadd.f32 0.5, %v2912_v50 }
 0x9e6   :  { %v2914_v29 = vmul.f32 %v2913_v14, %v7610_v60 }
 0xa54   :  { %v2917_v52 = vpop.permute.xlu0 %2916 }
 0xa55   :  { %v2919_v53 = vmul.f32 %v2917_v52, %v2913_v14 }
 0xa57   :  { %2921 = vrot.lane.b32.xlu1 %v2919_v53, %s7048_s13 }
 0xac9   :  { %v2922_v58 = vpop.permute.xlu1 %2921 }
 0xaca   :  { %v7681_v61 = vadd.f32 %v2922_v58, %v2914_v29 }
 0xacc   :  { %6975 = vtanh.f32 %v7681_v61 }
 0xad9   :  { %v6976_v37 = vpop.eup %6975 }
 0xada   :  { %2927 = vrot.lane.b32.xlu0 %v6976_v37, %s7047_s0 }
 0xb4c   :  { %v2928_v2 = vpop.permute.xlu0 %2927 }
 0xb4d   :  { %v2930_v31 = vmul.f32 %v2928_v2, %v2913_v14 }
 0xb4f   :  { %2932 = vrot.lane.b32.xlu1 %v2930_v31, %s7048_s13 }
 0xbc1   :  { %v2933_v23 = vpop.permute.xlu1 %2932 }
 0xbc2   :  { %v2934_v8 = vsel %vm884_vm5, %v2933_v23, 0 }
 0xbc3   :  { %v3005_v21 = vand.u32 4294901760, %v2934_v8 }
 0xbc5   :  { %v3006_v3 = vsub.f32 %v2934_v8, %v3005_v21  ;;  %6575 = vmatmul.mubr.f32.vlgmr.msra.gmra.mxu1 %v3005_v21 }
 0xbc6   :  { %6589 = vmatpush3.msra.mxu1 %v7252_v6  ;;  %6596 = vmatprep.mubr.msk.f32.mxu1 %vm7045_vm1, %v7044_v0 }
 0xbc7   :  { %v3007_v60 = vand.u32 4294901760, %v3006_v3  ;;  %6590 = vmatprep.subr.mxu1 %v7044_v0 }
 0xbc8   :  { %6591 = vmatpush3.msra.mxu1 %v7262_v18 }
 0xbc9   :  { %v3008_v28 = vsub.f32 %v3006_v3, %v3007_v60  ;;  %6592 = vmatprep.subr.mxu1 %v7044_v0 }
 0xbca   :  { %6593 = vmatpush3.msra.mxu1 %v7275_v26 }
 0xbcb   :  { %v3009_v45 = vand.u32 4294901760, %v3008_v28  ;;  %6594 = vmatprep.subr.mxu1 %v7044_v0 }
 0xbcc   :  { %6595 = vmatpush3.msra.mxu1 %v7290_v35 }
 0xbcd   :  { %6597 = vmatmul.mubr.f32.vlgmr.msra.gmra.mxu1 %v3007_v60  ;;  %6610 = vmatprep.subr.mxu1 %v7044_v0 }
 0xbce   :  { %6564 = vmatmul.mubr.f32.vlgmr.msra.gmra.mxu0 %v3009_v45  ;;  %6611 = vmatpush3.msra.mxu1 %v7252_v6 }
 0xbcf   :  { %6578 = vmatpush3.msra.mxu0 %v7260_v17  ;;  %6612 = vmatprep.subr.mxu1 %v7044_v0 }
 0xbd0   :  { %6579 = vmatprep.subr.mxu0 %v7044_v0  ;;  %6613 = vmatpush3.msra.mxu1 %v7262_v18 }
 0xbd1   :  { %6580 = vmatpush3.msra.mxu0 %v7273_v25  ;;  %6614 = vmatprep.subr.mxu1 %v7044_v0 }
 0xbd2   :  { %6581 = vmatprep.subr.mxu0 %v7044_v0  ;;  %6615 = vmatpush3.msra.mxu1 %v7275_v26 }
 0xbd3   :  { %6582 = vmatpush3.msra.mxu0 %v7288_v34  ;;  %6616 = vmatprep.subr.mxu1 %v7044_v0 }
 0xbd4   :  { %6583 = vmatprep.subr.mxu0 %v7044_v0  ;;  %6585 = vmatprep.mubr.msk.f32.mxu0 %vm7045_vm1, %v7044_v0 }
 0xbd5   :  { %6584 = vmatpush3.msra.mxu0 %v7305_v39  ;;  %6617 = vmatpush3.msra.mxu1 %v7290_v35 }
 0xbd6   :  { %6618 = vmatprep.mubr.msk.f32.mxu1 %vm7045_vm1, %v7044_v0  ;;  %6586 = vmatmul.mubr.f32.vlgmr.msra.gmra.mxu0 %v3006_v3 }
 0xbd7   :  { %6599 = vmatprep.subr.mxu0 %v7044_v0  ;;  %6619 = vmatmul.mubr.f32.vlgmr.msra.gmra.mxu1 %v3005_v21 }
 0xbd8   :  { %6600 = vmatpush3.msra.mxu0 %v7270_v24  ;;  %6607 = vmatprep.mubr.msk.f32.mxu0 %vm7045_vm1, %v7044_v0 }
 0xbd9   :  { %6601 = vmatprep.subr.mxu0 %v7044_v0  ;;  %6632 = vmatprep.subr.mxu1 %v7044_v0 }
 0xbda   :  { %6602 = vmatpush3.msra.mxu0 %v7285_v32  ;;  %6633 = vmatpush3.msra.mxu1 %v7297_v36 }
 0xbdb   :  { %6603 = vmatprep.subr.mxu0 %v7044_v0  ;;  %6634 = vmatprep.subr.mxu1 %v7044_v0 }
 0xbdc   :  { %6604 = vmatpush3.msra.mxu0 %v7302_v38  ;;  %6635 = vmatpush3.msra.mxu1 %v7314_v40 }
 0xbdd   :  { %6605 = vmatprep.subr.mxu0 %v7044_v0  ;;  %6636 = vmatprep.subr.mxu1 %v7044_v0 }
 0xbde   :  { %6606 = vmatpush3.msra.mxu0 %v7319_v42  ;;  %6637 = vmatpush3.msra.mxu1 %v7329_v16 }
 0xbdf   :  { %6608 = vmatmul.mubr.f32.vlgmr.msra.gmra.mxu0 %v3005_v21  ;;  %6638 = vmatprep.subr.mxu1 %v7044_v0 }
 0xbe0   :  { %6639 = vmatpush3.msra.mxu1 %v7341_v20  ;;  %6621 = vmatprep.subr.mxu0 %v7044_v0 }
 0xbe1   :  { %6640 = vmatprep.mubr.msk.f32.mxu1 %vm7045_vm1, %v7044_v0  ;;  %6654 = vmatprep.subr.mxu1 %v7044_v0 }
 0xbe2   :  { %6622 = vmatpush3.msra.mxu0 %v7252_v6  ;;  %6629 = vmatprep.mubr.msk.f32.mxu0 %vm7045_vm1, %v7044_v0 }
 0xbe3   :  { %6623 = vmatprep.subr.mxu0 %v7044_v0 }
 0xbe4   :  { %6624 = vmatpush3.msra.mxu0 %v7262_v18 }
 0xbe5   :  { %6625 = vmatprep.subr.mxu0 %v7044_v0 }
 0xbe6   :  { %6626 = vmatpush3.msra.mxu0 %v7275_v26 }
 0xbe7   :  { %6627 = vmatprep.subr.mxu0 %v7044_v0 }
 0xbe8   :  { %6628 = vmatpush3.msra.mxu0 %v7290_v35 }
 0xbe9   :  { %6643 = vmatprep.subr.mxu0 %v7044_v0 }
 0xc85   :  { %v3102_v46 = vpop.f32.mrf.mxu1 }
 0xc87   :  { %v6576_v30 = vpop.f32.mrf.mxu1 }
 0xc8d   :  { %v3259_v11 = vpop.f32.mrf.mxu1 }
 0xc8e   :  { %v3011_v43 = vpop.f32.mrf.mxu0 }
 0xc8f   :  { %v6598_v4 = vpop.f32.mrf.mxu1  ;;  %v3103_v51 = vadd.f32 %v3102_v46, %v3011_v43 }
 0xc90   :  { %v6565_v48 = vpop.f32.mrf.mxu0 }
 0xc96   :  { %v3182_v13 = vpop.f32.mrf.mxu0 }
 0xc97   :  { %v3417_v54 = vpop.f32.mrf.mxu1  ;;  %v3183_v59 = vadd.f32 %v3182_v13, %v3103_v51 }
 0xc98   :  { %v6587_v22 = vpop.f32.mrf.mxu0 }
 0xc99   :  { %v6620_v55 = vpop.f32.mrf.mxu1  ;;  %v3260_v33 = vadd.f32 %v3259_v11, %v3183_v59 }
 0xc9f   :  { %v3342_v10 = vpop.f32.mrf.mxu0 }
 0xca0   :  { %v3343_v19 = vadd.f32 %v3342_v10, %v3260_v33 }
 0xca1   :  { %v6609_v27 = vpop.f32.mrf.mxu0 }
 0xca2   :  { %v3418_v1 = vadd.f32 %v3417_v54, %v3343_v19 }
 0xca4   :  { %v3421_v57 = vadd.f32 %v3418_v1, %v7449_v49 }
 0xca6   :  { %v3422_v41 = vmul.f32 %v3421_v57, %v7463_v9 }
 0xca8   :  { %6977 = vtanh.f32 %v3422_v41 }
 0xcb5   :  { %v6978_v5 = vpop.eup %6977 }
 0xcb6   :  { %3428 = vrot.lane.b32.xlu0 %v6978_v5, %s7047_s0  ;;  %v3424_v7 = vmul.f32 0.5, %v6978_v5 }
 0xcb8   :  { %v3425_v44 = vadd.f32 0.5, %v3424_v7 }
 0xcba   :  { %v3426_v50 = vmul.f32 %v3425_v44, %v7681_v61 }
 0xd28   :  { %v3429_v47 = vpop.permute.xlu0 %3428 }
 0xd29   :  { %v3431_v63 = vmul.f32 %v3429_v47, %v3425_v44 }
 0xd2b   :  { %3433 = vrot.lane.b32.xlu1 %v3431_v63, %s7048_s13 }
 0xd9d   :  { %v3434_v14 = vpop.permute.xlu1 %3433 }
 0xd9e   :  { %v7752_v52 = vadd.f32 %v3434_v14, %v3426_v50 }
 0xda0   :  { %6979 = vtanh.f32 %v7752_v52 }
 0xdad   :  { %v6980_v49 = vpop.eup %6979 }
 0xdae   :  { %3439 = vrot.lane.b32.xlu0 %v6980_v49, %s7047_s0 }
 0xe20   :  { %v3440_v53 = vpop.permute.xlu0 %3439 }
 0xe21   :  { %v3442_v29 = vmul.f32 %v3440_v53, %v3425_v44 }
 0xe23   :  { %3444 = vrot.lane.b32.xlu1 %v3442_v29, %s7048_s13 }
 0xe95   :  { %v3445_v58 = vpop.permute.xlu1 %3444 }
 0xe96   :  { %v3446_v37 = vsel %vm884_vm5, %v3445_v58, 0 }
 0xe97   :  { %v3517_v2 = vand.u32 4294901760, %v3446_v37 }
 0xe99   :  { %v3518_v31 = vsub.f32 %v3446_v37, %v3517_v2  ;;  %6641 = vmatmul.mubr.f32.vlgmr.msra.gmra.mxu1 %v3517_v2 }
 0xe9a   :  { %6655 = vmatpush3.msra.mxu1 %v7252_v6  ;;  %6662 = vmatprep.mubr.msk.f32.mxu1 %vm7045_vm1, %v7044_v0 }
 0xe9b   :  { %v3519_v61 = vand.u32 4294901760, %v3518_v31  ;;  %6656 = vmatprep.subr.mxu1 %v7044_v0 }
 0xe9c   :  { %6657 = vmatpush3.msra.mxu1 %v7262_v18 }
 0xe9d   :  { %v3520_v23 = vsub.f32 %v3518_v31, %v3519_v61  ;;  %6658 = vmatprep.subr.mxu1 %v7044_v0 }
 0xe9e   :  { %6659 = vmatpush3.msra.mxu1 %v7275_v26 }
 0xe9f   :  { %v3521_v8 = vand.u32 4294901760, %v3520_v23  ;;  %6660 = vmatprep.subr.mxu1 %v7044_v0 }
 0xea0   :  { %6661 = vmatpush3.msra.mxu1 %v7290_v35 }
 0xea1   :  { %6663 = vmatmul.mubr.f32.vlgmr.msra.gmra.mxu1 %v3519_v61  ;;  %6676 = vmatprep.subr.mxu1 %v7044_v0 }
 0xea2   :  { %6630 = vmatmul.mubr.f32.vlgmr.msra.gmra.mxu0 %v3521_v8  ;;  %6677 = vmatpush3.msra.mxu1 %v7252_v6 }
 0xea3   :  { %6644 = vmatpush3.msra.mxu0 %v7260_v17  ;;  %6678 = vmatprep.subr.mxu1 %v7044_v0 }
 0xea4   :  { %6645 = vmatprep.subr.mxu0 %v7044_v0  ;;  %6679 = vmatpush3.msra.mxu1 %v7262_v18 }
 0xea5   :  { %6646 = vmatpush3.msra.mxu0 %v7273_v25  ;;  %6680 = vmatprep.subr.mxu1 %v7044_v0 }
 0xea6   :  { %6647 = vmatprep.subr.mxu0 %v7044_v0  ;;  %6681 = vmatpush3.msra.mxu1 %v7275_v26 }
 0xea7   :  { %6648 = vmatpush3.msra.mxu0 %v7288_v34  ;;  %6682 = vmatprep.subr.mxu1 %v7044_v0 }
 0xea8   :  { %6649 = vmatprep.subr.mxu0 %v7044_v0  ;;  %6651 = vmatprep.mubr.msk.f32.mxu0 %vm7045_vm1, %v7044_v0 }
 0xea9   :  { %6650 = vmatpush3.msra.mxu0 %v7305_v39  ;;  %6683 = vmatpush3.msra.mxu1 %v7290_v35 }
 0xeaa   :  { %6684 = vmatprep.mubr.msk.f32.mxu1 %vm7045_vm1, %v7044_v0  ;;  %6652 = vmatmul.mubr.f32.vlgmr.msra.gmra.mxu0 %v3518_v31 }
 0xeab   :  { %6665 = vmatprep.subr.mxu0 %v7044_v0  ;;  %6685 = vmatmul.mubr.f32.vlgmr.msra.gmra.mxu1 %v3517_v2 }
 0xeac   :  { %6666 = vmatpush3.msra.mxu0 %v7270_v24  ;;  %6673 = vmatprep.mubr.msk.f32.mxu0 %vm7045_vm1, %v7044_v0 }
 0xead   :  { %6667 = vmatprep.subr.mxu0 %v7044_v0  ;;  %6698 = vmatprep.subr.mxu1 %v7044_v0 }
 0xeae   :  { %6668 = vmatpush3.msra.mxu0 %v7285_v32  ;;  %6699 = vmatpush3.msra.mxu1 %v7297_v36 }
 0xeaf   :  { %6669 = vmatprep.subr.mxu0 %v7044_v0  ;;  %6700 = vmatprep.subr.mxu1 %v7044_v0 }
 0xeb0   :  { %6670 = vmatpush3.msra.mxu0 %v7302_v38  ;;  %6701 = vmatpush3.msra.mxu1 %v7314_v40 }
 0xeb1   :  { %6671 = vmatprep.subr.mxu0 %v7044_v0  ;;  %6702 = vmatprep.subr.mxu1 %v7044_v0 }
 0xeb2   :  { %6672 = vmatpush3.msra.mxu0 %v7319_v42  ;;  %6703 = vmatpush3.msra.mxu1 %v7329_v16 }
 0xeb3   :  { %6674 = vmatmul.mubr.f32.vlgmr.msra.gmra.mxu0 %v3517_v2  ;;  %6704 = vmatprep.subr.mxu1 %v7044_v0 }
 0xeb4   :  { %6705 = vmatpush3.msra.mxu1 %v7341_v20  ;;  %6687 = vmatprep.subr.mxu0 %v7044_v0 }
 0xeb5   :  { %6706 = vmatprep.mubr.msk.f32.mxu1 %vm7045_vm1, %v7044_v0  ;;  %6720 = vmatprep.subr.mxu1 %v7044_v0 }
 0xeb6   :  { %6688 = vmatpush3.msra.mxu0 %v7252_v6  ;;  %6695 = vmatprep.mubr.msk.f32.mxu0 %vm7045_vm1, %v7044_v0 }
 0xeb7   :  { %6689 = vmatprep.subr.mxu0 %v7044_v0 }
 0xeb8   :  { %6690 = vmatpush3.msra.mxu0 %v7262_v18 }
 0xeb9   :  { %6691 = vmatprep.subr.mxu0 %v7044_v0 }
 0xeba   :  { %6692 = vmatpush3.msra.mxu0 %v7275_v26 }
 0xebb   :  { %6693 = vmatprep.subr.mxu0 %v7044_v0 }
 0xebc   :  { %6694 = vmatpush3.msra.mxu0 %v7290_v35 }
 0xebd   :  { %6709 = vmatprep.subr.mxu0 %v7044_v0 }
 0xf59   :  { %v3614_v21 = vpop.f32.mrf.mxu1 }
 0xf5b   :  { %v6642_v3 = vpop.f32.mrf.mxu1 }
 0xf61   :  { %v3771_v60 = vpop.f32.mrf.mxu1 }
 0xf62   :  { %v3523_v28 = vpop.f32.mrf.mxu0 }
 0xf63   :  { %v6664_v45 = vpop.f32.mrf.mxu1  ;;  %v3615_v43 = vadd.f32 %v3614_v21, %v3523_v28 }
 0xf64   :  { %v6631_v46 = vpop.f32.mrf.mxu0 }
 0xf6a   :  { %v3694_v30 = vpop.f32.mrf.mxu0 }
 0xf6b   :  { %v3929_v11 = vpop.f32.mrf.mxu1  ;;  %v3695_v13 = vadd.f32 %v3694_v30, %v3615_v43 }
 0xf6c   :  { %v6653_v4 = vpop.f32.mrf.mxu0 }
 0xf6d   :  { %v6686_v48 = vpop.f32.mrf.mxu1  ;;  %v3772_v54 = vadd.f32 %v3771_v60, %v3695_v13 }
 0xf73   :  { %v3854_v51 = vpop.f32.mrf.mxu0 }
 0xf74   :  { %v3855_v22 = vadd.f32 %v3854_v51, %v3772_v54 }
 0xf75   :  { %v6675_v55 = vpop.f32.mrf.mxu0 }
 0xf76   :  { %v3930_v59 = vadd.f32 %v3929_v11, %v3855_v22 }
 0xf78   :  { %v3933_v33 = vadd.f32 %v3930_v59, %v7451_v56 }
 0xf7a   :  { %v3934_v10 = vmul.f32 %v3933_v33, %v7463_v9  ;;  %v4979_v33 = vmul.f32 %v7463_v9, %v7457_v15 }
 0xf7c   :  { %6981 = vtanh.f32 %v3934_v10 }
 0xf89   :  { %v6982_v19 = vpop.eup %6981 }
 0xf8a   :  { %3940 = vrot.lane.b32.xlu0 %v6982_v19, %s7047_s0  ;;  %v3936_v27 = vmul.f32 0.5, %v6982_v19 }
 0xf8c   :  { %v3937_v1 = vadd.f32 0.5, %v3936_v27 }
 0xf8e   :  { %v3938_v5 = vmul.f32 %v3937_v1, %v7752_v52 }
 0xffc   :  { %v3941_v57 = vpop.permute.xlu0 %3940 }
 0xffd   :  { %v3943_v41 = vmul.f32 %v3941_v57, %v3937_v1 }
 0xfff   :  { %3945 = vrot.lane.b32.xlu1 %v3943_v41, %s7048_s13 }
0x1071   :  { %v3946_v7 = vpop.permute.xlu1 %3945 }
0x1072   :  { %v7823_v44 = vadd.f32 %v3946_v7, %v3938_v5 }
0x1074   :  { %6983 = vtanh.f32 %v7823_v44 }
0x1081   :  { %v6984_v56 = vpop.eup %6983 }
0x1082   :  { %3951 = vrot.lane.b32.xlu0 %v6984_v56, %s7047_s0 }
0x10f4   :  { %v3952_v47 = vpop.permute.xlu0 %3951 }
0x10f5   :  { %v3954_v63 = vmul.f32 %v3952_v47, %v3937_v1 }
0x10f7   :  { %3956 = vrot.lane.b32.xlu1 %v3954_v63, %s7048_s13 }
0x1169   :  { %v3957_v50 = vpop.permute.xlu1 %3956 }
0x116a   :  { %v3958_v14 = vsel %vm884_vm5, %v3957_v50, 0 }
0x116b   :  { %v4029_v49 = vand.u32 4294901760, %v3958_v14 }
0x116d   :  { %v4030_v53 = vsub.f32 %v3958_v14, %v4029_v49  ;;  %6707 = vmatmul.mubr.f32.vlgmr.msra.gmra.mxu1 %v4029_v49 }
0x116e   :  { %6721 = vmatpush3.msra.mxu1 %v7252_v6  ;;  %6728 = vmatprep.mubr.msk.f32.mxu1 %vm7045_vm1, %v7044_v0 }
0x116f   :  { %v4031_v52 = vand.u32 4294901760, %v4030_v53  ;;  %6722 = vmatprep.subr.mxu1 %v7044_v0 }
0x1170   :  { %6723 = vmatpush3.msra.mxu1 %v7262_v18 }
0x1171   :  { %v4032_v29 = vsub.f32 %v4030_v53, %v4031_v52  ;;  %6724 = vmatprep.subr.mxu1 %v7044_v0 }
0x1172   :  { %6725 = vmatpush3.msra.mxu1 %v7275_v26 }
0x1173   :  { %v4033_v58 = vand.u32 4294901760, %v4032_v29  ;;  %6726 = vmatprep.subr.mxu1 %v7044_v0 }
0x1174   :  { %6727 = vmatpush3.msra.mxu1 %v7290_v35 }
0x1175   :  { %6729 = vmatmul.mubr.f32.vlgmr.msra.gmra.mxu1 %v4031_v52  ;;  %6742 = vmatprep.subr.mxu1 %v7044_v0 }
0x1176   :  { %6696 = vmatmul.mubr.f32.vlgmr.msra.gmra.mxu0 %v4033_v58  ;;  %6743 = vmatpush3.msra.mxu1 %v7252_v6 }
0x1177   :  { %6710 = vmatpush3.msra.mxu0 %v7260_v17  ;;  %6744 = vmatprep.subr.mxu1 %v7044_v0 }
0x1178   :  { %6711 = vmatprep.subr.mxu0 %v7044_v0  ;;  %6745 = vmatpush3.msra.mxu1 %v7262_v18 }
0x1179   :  { %6712 = vmatpush3.msra.mxu0 %v7273_v25  ;;  %6746 = vmatprep.subr.mxu1 %v7044_v0 }
0x117a   :  { %6713 = vmatprep.subr.mxu0 %v7044_v0  ;;  %6747 = vmatpush3.msra.mxu1 %v7275_v26 }
0x117b   :  { %6714 = vmatpush3.msra.mxu0 %v7288_v34  ;;  %6748 = vmatprep.subr.mxu1 %v7044_v0 }
0x117c   :  { %6715 = vmatprep.subr.mxu0 %v7044_v0  ;;  %6717 = vmatprep.mubr.msk.f32.mxu0 %vm7045_vm1, %v7044_v0 }
0x117d   :  { %6716 = vmatpush3.msra.mxu0 %v7305_v39  ;;  %6749 = vmatpush3.msra.mxu1 %v7290_v35 }
0x117e   :  { %6750 = vmatprep.mubr.msk.f32.mxu1 %vm7045_vm1, %v7044_v0  ;;  %6718 = vmatmul.mubr.f32.vlgmr.msra.gmra.mxu0 %v4030_v53 }
0x117f   :  { %6731 = vmatprep.subr.mxu0 %v7044_v0  ;;  %6751 = vmatmul.mubr.f32.vlgmr.msra.gmra.mxu1 %v4029_v49 }
0x1180   :  { %6732 = vmatpush3.msra.mxu0 %v7270_v24  ;;  %6739 = vmatprep.mubr.msk.f32.mxu0 %vm7045_vm1, %v7044_v0 }
0x1181   :  { %6733 = vmatprep.subr.mxu0 %v7044_v0  ;;  %6764 = vmatprep.subr.mxu1 %v7044_v0 }
0x1182   :  { %6734 = vmatpush3.msra.mxu0 %v7285_v32  ;;  %6765 = vmatpush3.msra.mxu1 %v7297_v36 }
0x1183   :  { %6735 = vmatprep.subr.mxu0 %v7044_v0  ;;  %6766 = vmatprep.subr.mxu1 %v7044_v0 }
0x1184   :  { %6736 = vmatpush3.msra.mxu0 %v7302_v38  ;;  %6767 = vmatpush3.msra.mxu1 %v7314_v40 }
0x1185   :  { %6737 = vmatprep.subr.mxu0 %v7044_v0  ;;  %6768 = vmatprep.subr.mxu1 %v7044_v0 }
0x1186   :  { %6738 = vmatpush3.msra.mxu0 %v7319_v42  ;;  %6769 = vmatpush3.msra.mxu1 %v7329_v16 }
0x1187   :  { %6740 = vmatmul.mubr.f32.vlgmr.msra.gmra.mxu0 %v4029_v49  ;;  %6770 = vmatprep.subr.mxu1 %v7044_v0 }
0x1188   :  { %6771 = vmatpush3.msra.mxu1 %v7341_v20  ;;  %6753 = vmatprep.subr.mxu0 %v7044_v0 }
0x1189   :  { %6772 = vmatprep.mubr.msk.f32.mxu1 %vm7045_vm1, %v7044_v0  ;;  %6786 = vmatprep.subr.mxu1 %v7044_v0 }
0x118a   :  { %6754 = vmatpush3.msra.mxu0 %v7252_v6  ;;  %6761 = vmatprep.mubr.msk.f32.mxu0 %vm7045_vm1, %v7044_v0 }
0x118b   :  { %6755 = vmatprep.subr.mxu0 %v7044_v0 }
0x118c   :  { %6756 = vmatpush3.msra.mxu0 %v7262_v18 }
0x118d   :  { %6757 = vmatprep.subr.mxu0 %v7044_v0 }
0x118e   :  { %6758 = vmatpush3.msra.mxu0 %v7275_v26 }
0x118f   :  { %6759 = vmatprep.subr.mxu0 %v7044_v0 }
0x1190   :  { %6760 = vmatpush3.msra.mxu0 %v7290_v35 }
0x1191   :  { %6775 = vmatprep.subr.mxu0 %v7044_v0 }
0x122d   :  { %v4126_v36 = vpop.f32.mrf.mxu1 }
0x122f   :  { %v6708_v40 = vpop.f32.mrf.mxu1 }
0x1235   :  { %v4283_v16 = vpop.f32.mrf.mxu1 }
0x1236   :  { %v4035_v20 = vpop.f32.mrf.mxu0 }
0x1237   :  { %v6730_v37 = vpop.f32.mrf.mxu1  ;;  %v4127_v23 = vadd.f32 %v4126_v36, %v4035_v20 }
0x1238   :  { %v6697_v2 = vpop.f32.mrf.mxu0 }
0x123e   :  { %v4206_v31 = vpop.f32.mrf.mxu0 }
0x123f   :  { %v4441_v61 = vpop.f32.mrf.mxu1  ;;  %v4207_v3 = vadd.f32 %v4206_v31, %v4127_v23 }
0x1240   :  { %v6719_v8 = vpop.f32.mrf.mxu0 }
0x1241   :  { %v6752_v21 = vpop.f32.mrf.mxu1  ;;  %v4284_v60 = vadd.f32 %v4283_v16, %v4207_v3 }
0x1247   :  { %v4366_v28 = vpop.f32.mrf.mxu0 }
0x1248   :  { %v4367_v45 = vadd.f32 %v4366_v28, %v4284_v60 }
0x1249   :  { %v6741_v46 = vpop.f32.mrf.mxu0 }
0x124a   :  { %v4442_v30 = vadd.f32 %v4441_v61, %v4367_v45 }
0x124c   :  { %v4445_v11 = vadd.f32 %v4442_v30, %v7453_v62 }
0x124e   :  { %v4446_v43 = vmul.f32 %v4445_v11, %v7463_v9 }
0x1250   :  { %6985 = vtanh.f32 %v4446_v43 }
0x125d   :  { %v6986_v4 = vpop.eup %6985 }
0x125e   :  { %4452 = vrot.lane.b32.xlu0 %v6986_v4, %s7047_s0  ;;  %v4448_v48 = vmul.f32 0.5, %v6986_v4 }
0x1260   :  { %v4449_v13 = vadd.f32 0.5, %v4448_v48 }
0x1262   :  { %v4450_v22 = vmul.f32 %v4449_v13, %v7823_v44 }
0x12d0   :  { %v4453_v54 = vpop.permute.xlu0 %4452 }
0x12d1   :  { %v4455_v51 = vmul.f32 %v4453_v54, %v4449_v13 }
0x12d3   :  { %4457 = vrot.lane.b32.xlu1 %v4455_v51, %s7048_s13 }
0x1345   :  { %v4458_v55 = vpop.permute.xlu1 %4457 }
0x1346   :  { %v7894_v59 = vadd.f32 %v4458_v55, %v4450_v22 }
0x1348   :  { %6987 = vtanh.f32 %v7894_v59 }
0x1349   :  { %6989 = vtanh.f32 %v4979_v33 }
0x1355   :  { %v6988_v62 = vpop.eup %6987 }
0x1356   :  { %4463 = vrot.lane.b32.xlu0 %v6988_v62, %s7047_s0  ;;  %v6990_v27 = vpop.eup %6989 }
0x1357   :  { %v4981_v1 = vmul.f32 0.5, %v6990_v27 }
0x1359   :  { %v7903_v7 = vadd.f32 0.5, %v4981_v1 }
0x13c8   :  { %v4464_v10 = vpop.permute.xlu0 %4463 }
0x13c9   :  { %v4466_v19 = vmul.f32 %v4464_v10, %v4449_v13 }
0x13cb   :  { %4468 = vrot.lane.b32.xlu1 %v4466_v19, %s7048_s13 }
0x13cf   :  { %4984 = vrot.lane.b32.xlu1 %v6990_v27, %s7047_s0 }
0x143d   :  { %v4469_v57 = vpop.permute.xlu1 %4468 }
0x143e   :  { %v4470_v41 = vsel %vm884_vm5, %v4469_v57, 0 }
0x143f   :  { %v4541_v5 = vand.u32 4294901760, %v4470_v41 }
0x1441   :  { %v4542_v44 = vsub.f32 %v4470_v41, %v4541_v5  ;;  %6773 = vmatmul.mubr.f32.vlgmr.msra.gmra.mxu1 %v4541_v5  ;;  %v4985_v56 = vpop.permute.xlu1 %4984 }
0x1442   :  { %6787 = vmatpush3.msra.mxu1 %v7252_v6  ;;  %v4987_v15 = vmul.f32 %v4985_v56, %v7903_v7  ;;  %6794 = vmatprep.mubr.msk.f32.mxu1 %vm7045_vm1, %v7044_v0 }
0x1443   :  { %v4543_v47 = vand.u32 4294901760, %v4542_v44  ;;  %6788 = vmatprep.subr.mxu1 %v7044_v0 }
0x1444   :  { %6991 = vtanh.f32 %v4987_v15  ;;  %6789 = vmatpush3.msra.mxu1 %v7262_v18 }
0x1445   :  { %v4544_v63 = vsub.f32 %v4542_v44, %v4543_v47  ;;  %6790 = vmatprep.subr.mxu1 %v7044_v0 }
0x1446   :  { %6791 = vmatpush3.msra.mxu1 %v7275_v26 }
0x1447   :  { %v4545_v50 = vand.u32 4294901760, %v4544_v63  ;;  %6792 = vmatprep.subr.mxu1 %v7044_v0 }
0x1448   :  { %6793 = vmatpush3.msra.mxu1 %v7290_v35 }
0x1449   :  { %6795 = vmatmul.mubr.f32.vlgmr.msra.gmra.mxu1 %v4543_v47  ;;  %6808 = vmatprep.subr.mxu1 %v7044_v0 }
0x144a   :  { %6762 = vmatmul.mubr.f32.vlgmr.msra.gmra.mxu0 %v4545_v50  ;;  %6809 = vmatpush3.msra.mxu1 %v7252_v6 }
0x144b   :  { %6776 = vmatpush3.msra.mxu0 %v7260_v17  ;;  %6810 = vmatprep.subr.mxu1 %v7044_v0  ;;  %v48_v17 = vld [vmem:[#allocation2 + $0x160] sm:$0xff] }
0x144c   :  { %6777 = vmatprep.subr.mxu0 %v7044_v0  ;;  %6811 = vmatpush3.msra.mxu1 %v7262_v18  ;;  %v7950_v18 = vand.u32 4294901760, %v48_v17 }
0x144d   :  { %6778 = vmatpush3.msra.mxu0 %v7273_v25  ;;  %6812 = vmatprep.subr.mxu1 %v7044_v0 }
0x144e   :  { %6779 = vmatprep.subr.mxu0 %v7044_v0  ;;  %6813 = vmatpush3.msra.mxu1 %v7275_v26  ;;  %v7953_v25 = vsub.f32 %v48_v17, %v7950_v18 }
0x144f   :  { %6780 = vmatpush3.msra.mxu0 %v7288_v34  ;;  %6814 = vmatprep.subr.mxu1 %v7044_v0 }
0x1450   :  { %6781 = vmatprep.subr.mxu0 %v7044_v0  ;;  %6783 = vmatprep.mubr.msk.f32.mxu0 %vm7045_vm1, %v7044_v0  ;;  %v5105_v34 = vand.u32 4294901760, %v7953_v25 }
0x1451   :  { %v6992_v6 = vpop.eup %6991  ;;  %6782 = vmatpush3.msra.mxu0 %v7305_v39  ;;  %6815 = vmatpush3.msra.mxu1 %v7290_v35  ;;  %v45_v39 = vld [vmem:[#allocation2 + $0x130] sm:$0xff] }
0x1452   :  { %6816 = vmatprep.mubr.msk.f32.mxu1 %vm7045_vm1, %v7044_v0  ;;  %6784 = vmatmul.mubr.f32.vlgmr.msra.gmra.mxu0 %v4542_v44  ;;  %v7974_v53 = vand.u32 4294901760, %v45_v39 }
0x1453   :  { %6797 = vmatprep.subr.mxu0 %v7044_v0  ;;  %6817 = vmatmul.mubr.f32.vlgmr.msra.gmra.mxu1 %v4541_v5 }
0x1454   :  { %6798 = vmatpush3.msra.mxu0 %v7270_v24  ;;  %4990 = vrot.lane.b32.xlu1 %v6992_v6, %s7049_s14  ;;  %v47_v24 = vld [vmem:[#allocation2 + $0x150] sm:$0xff]  ;;  %v7983_v36 = vsub.f32 %v45_v39, %v7974_v53 }
0x1455   :  { %6799 = vmatprep.subr.mxu0 %v7044_v0  ;;  %6805 = vmatprep.mubr.msk.f32.mxu0 %vm7045_vm1, %v7044_v0  ;;  %v7955_v26 = vand.u32 4294901760, %v47_v24 }
0x1456   :  { %6800 = vmatpush3.msra.mxu0 %v7285_v32  ;;  %6830 = vmatprep.subr.mxu1 %v7044_v0  ;;  %v46_v32 = vld [vmem:[#allocation2 + $0x140] sm:$0xff]  ;;  %v5126_v20 = vand.u32 4294901760, %v7983_v36 }
0x1457   :  { %6801 = vmatprep.subr.mxu0 %v7044_v0  ;;  %6838 = vmatprep.mubr.msk.f32.mxu1 %vm7045_vm1, %v7044_v0  ;;  %v7961_v35 = vsub.f32 %v47_v24, %v7955_v26 }
0x1458   :  { %6802 = vmatpush3.msra.mxu0 %v7302_v38  ;;  %v7963_v38 = vand.u32 4294901760, %v46_v32  ;;  %v5127_v2 = vsub.f32 %v7983_v36, %v5126_v20 }
0x1459   :  { %6803 = vmatprep.subr.mxu0 %v7044_v0  ;;  %v5112_v14 = vand.u32 4294901760, %v7961_v35 }
0x145a   :  { %6804 = vmatpush3.msra.mxu0 %v7319_v42  ;;  %v5106_v42 = vsub.f32 %v7953_v25, %v5105_v34  ;;  %v7972_v49 = vsub.f32 %v46_v32, %v7963_v38  ;;  %v5128_v31 = vand.u32 4294901760, %v5127_v2 }
0x145b   :  { %6806 = vmatmul.mubr.f32.vlgmr.msra.gmra.mxu0 %v4541_v5  ;;  %6819 = vmatprep.subr.mxu0 %v7044_v0  ;;  %v5113_v29 = vsub.f32 %v7961_v35, %v5112_v14 }
0x145c   :  { %6827 = vmatprep.mubr.msk.f32.mxu0 %vm7045_vm1, %v7044_v0  ;;  %6820 = vmatpush3.msra.mxu0 %v7950_v18  ;;  %v5107_v52 = vand.u32 4294901760, %v5106_v42  ;;  %v5119_v58 = vand.u32 4294901760, %v7972_v49 }
0x145d   :  { %6821 = vmatprep.subr.mxu0 %v7044_v0  ;;  %v5114_v40 = vand.u32 4294901760, %v5113_v29  ;;  %v44_v29 = vld [vmem:[#allocation2 + $0x120] sm:$0xff] }
0x145e   :  { %6822 = vmatpush3.msra.mxu0 %v7955_v26  ;;  %6831 = vmatpush3.msra.mxu1 %v5107_v52  ;;  %v5120_v16 = vsub.f32 %v7972_v49, %v5119_v58 }
0x145f   :  { %6823 = vmatprep.subr.mxu0 %v7044_v0  ;;  %6832 = vmatprep.subr.mxu1 %v7044_v0 }
0x1460   :  { %6824 = vmatpush3.msra.mxu0 %v7963_v38  ;;  %6833 = vmatpush3.msra.mxu1 %v5114_v40  ;;  %v5121_v37 = vand.u32 4294901760, %v5120_v16  ;;  %v5514_v40 = vand.u32 4294901760, %v44_v29 }
0x1461   :  { %6825 = vmatprep.subr.mxu0 %v7044_v0  ;;  %6834 = vmatprep.subr.mxu1 %v7044_v0 }
0x1462   :  { %6826 = vmatpush3.msra.mxu0 %v7974_v53  ;;  %6835 = vmatpush3.msra.mxu1 %v5121_v37  ;;  %v8064_v37 = vsub.f32 %v44_v29, %v5514_v40 }
0x1463   :  { %6841 = vmatprep.subr.mxu0 %v7044_v0  ;;  %6836 = vmatprep.subr.mxu1 %v7044_v0 }
0x1464   :  { %6837 = vmatpush3.msra.mxu1 %v5128_v31  ;;  %v5595_v31 = vand.u32 4294901760, %v8064_v37 }
0x1465   :  { %6852 = vmatprep.subr.mxu1 %v7044_v0 }
0x14c6   :  { %v4991_v61 = vpop.permute.xlu1 %4990 }
0x14c7   :  { %v4993_v23 = vmul.f32 %v4991_v61, %v7903_v7 }
0x14c9   :  { %4995 = vrot.lane.b32.xlu1 %v4993_v23, %s7048_s13 }
0x1501   :  { %v4638_v8 = vpop.f32.mrf.mxu1 }
0x1503   :  { %v6774_v21 = vpop.f32.mrf.mxu1 }
0x1509   :  { %v4795_v3 = vpop.f32.mrf.mxu1 }
0x150a   :  { %v4547_v60 = vpop.f32.mrf.mxu0 }
0x150b   :  { %v6796_v28 = vpop.f32.mrf.mxu1  ;;  %v4639_v11 = vadd.f32 %v4638_v8, %v4547_v60  ;;  %v5596_v8 = vsub.f32 %v8064_v37, %v5595_v31 }
0x150c   :  { %v6763_v45 = vpop.f32.mrf.mxu0 }
0x150d   :  { %v5597_v60 = vand.u32 4294901760, %v5596_v8 }
0x1512   :  { %v4718_v46 = vpop.f32.mrf.mxu0 }
0x1513   :  { %v4953_v30 = vpop.f32.mrf.mxu1  ;;  %v4719_v48 = vadd.f32 %v4718_v46, %v4639_v11 }
0x1514   :  { %v6785_v43 = vpop.f32.mrf.mxu0 }
0x1515   :  { %v6818_v4 = vpop.f32.mrf.mxu1  ;;  %v4796_v13 = vadd.f32 %v4795_v3, %v4719_v48 }
0x151b   :  { %v4878_v54 = vpop.f32.mrf.mxu0 }
0x151c   :  { %v4879_v51 = vadd.f32 %v4878_v54, %v4796_v13 }
0x151d   :  { %v6807_v22 = vpop.f32.mrf.mxu0 }
0x151e   :  { %v4954_v55 = vadd.f32 %v4953_v30, %v4879_v51  ;;  %v41_v30 = vld [vmem:[#allocation2 + $0xf0] sm:$0xff] }
0x151f   :  { %v5523_v11 = vand.u32 4294901760, %v41_v30 }
0x1520   :  { %v4957_v62 = vadd.f32 %v4954_v55, %v7455_v12 }
0x1521   :  { %v5615_v43 = vsub.f32 %v41_v30, %v5523_v11 }
0x1522   :  { %v4958_v33 = vmul.f32 %v4957_v62, %v7463_v9 }
0x1523   :  { %v5616_v4 = vand.u32 4294901760, %v5615_v43 }
0x1524   :  { %6993 = vtanh.f32 %v4958_v33 }
0x1525   :  { %v5617_v48 = vsub.f32 %v5615_v43, %v5616_v4 }
0x1527   :  { %v5618_v13 = vand.u32 4294901760, %v5617_v48 }
0x1531   :  { %v6994_v10 = vpop.eup %6993 }
0x1532   :  { %4964 = vrot.lane.b32.xlu0 %v6994_v10, %s7047_s0  ;;  %v4960_v5 = vmul.f32 0.5, %v6994_v10 }
0x1534   :  { %v8052_v7 = vadd.f32 0.5, %v4960_v5 }
0x153b   :  { %v4996_v19 = vpop.permute.xlu1 %4995 }
0x153c   :  { %v4997_v27 = vsel %vm884_vm5, %v4996_v19, 0 }
0x153d   :  { %v5068_v1 = vand.u32 4294901760, %v4997_v27 }
0x153f   :  { %v5069_v57 = vsub.f32 %v4997_v27, %v5068_v1  ;;  %6839 = vmatmul.mubr.f32.vlgmr.msra.gmra.mxu1 %v5068_v1 }
0x1540   :  { %6853 = vmatpush3.msra.mxu1 %v7950_v18  ;;  %6860 = vmatprep.mubr.msk.f32.mxu1 %vm7045_vm1, %v7044_v0 }
0x1541   :  { %v5070_v41 = vand.u32 4294901760, %v5069_v57  ;;  %6854 = vmatprep.subr.mxu1 %v7044_v0 }
0x1542   :  { %6855 = vmatpush3.msra.mxu1 %v7955_v26 }
0x1543   :  { %v5071_v12 = vsub.f32 %v5069_v57, %v5070_v41  ;;  %6856 = vmatprep.subr.mxu1 %v7044_v0 }
0x1544   :  { %6857 = vmatpush3.msra.mxu1 %v7963_v38 }
0x1545   :  { %v5072_v9 = vand.u32 4294901760, %v5071_v12  ;;  %6858 = vmatprep.subr.mxu1 %v7044_v0 }
0x1546   :  { %6859 = vmatpush3.msra.mxu1 %v7974_v53 }
0x1547   :  { %6861 = vmatmul.mubr.f32.vlgmr.msra.gmra.mxu1 %v5070_v41  ;;  %6874 = vmatprep.subr.mxu1 %v7044_v0 }
0x1548   :  { %6828 = vmatmul.mubr.f32.vlgmr.msra.gmra.mxu0 %v5072_v9  ;;  %6875 = vmatpush3.msra.mxu1 %v7950_v18 }
0x1549   :  { %6842 = vmatpush3.msra.mxu0 %v7953_v25  ;;  %6876 = vmatprep.subr.mxu1 %v7044_v0 }
0x154a   :  { %6843 = vmatprep.subr.mxu0 %v7044_v0  ;;  %6877 = vmatpush3.msra.mxu1 %v7955_v26 }
0x154b   :  { %6844 = vmatpush3.msra.mxu0 %v7961_v35  ;;  %6878 = vmatprep.subr.mxu1 %v7044_v0 }
0x154c   :  { %6845 = vmatprep.subr.mxu0 %v7044_v0  ;;  %6879 = vmatpush3.msra.mxu1 %v7963_v38  ;;  %v4962_v38 = vmul.f32 %v8052_v7, %v7894_v59 }
0x154d   :  { %6846 = vmatpush3.msra.mxu0 %v7972_v49  ;;  %6880 = vmatprep.subr.mxu1 %v7044_v0 }
0x154e   :  { %6847 = vmatprep.subr.mxu0 %v7044_v0  ;;  %6849 = vmatprep.mubr.msk.f32.mxu0 %vm7045_vm1, %v7044_v0 }
0x154f   :  { %6848 = vmatpush3.msra.mxu0 %v7983_v36  ;;  %6881 = vmatpush3.msra.mxu1 %v7974_v53  ;;  %v42_v36 = vld [vmem:[#allocation2 + $0x100] sm:$0xff] }
0x1550   :  { %6882 = vmatprep.mubr.msk.f32.mxu1 %vm7045_vm1, %v7044_v0  ;;  %6850 = vmatmul.mubr.f32.vlgmr.msra.gmra.mxu0 %v5069_v57 }
0x1551   :  { %6863 = vmatprep.subr.mxu0 %v7044_v0  ;;  %6883 = vmatmul.mubr.f32.vlgmr.msra.gmra.mxu1 %v5068_v1 }
0x1552   :  { %6864 = vmatpush3.msra.mxu0 %v5105_v34  ;;  %6871 = vmatprep.mubr.msk.f32.mxu0 %vm7045_vm1, %v7044_v0 }
0x1553   :  { %6865 = vmatprep.subr.mxu0 %v7044_v0  ;;  %6896 = vmatprep.subr.mxu1 %v7044_v0 }
0x1554   :  { %6866 = vmatpush3.msra.mxu0 %v5112_v14  ;;  %6904 = vmatprep.mubr.msk.f32.mxu1 %vm7045_vm1, %v7044_v0 }
0x1555   :  { %6867 = vmatprep.subr.mxu0 %v7044_v0  ;;  %6897 = vmatpush3.msra.mxu1 %v5597_v60 }
0x1556   :  { %6868 = vmatpush3.msra.mxu0 %v5119_v58  ;;  %v43_v58 = vld [vmem:[#allocation2 + $0x110] sm:$0xff]  ;;  %6898 = vmatprep.subr.mxu1 %v7044_v0 }
0x1557   :  { %6869 = vmatprep.subr.mxu0 %v7044_v0  ;;  %v8060_v16 = vand.u32 4294901760, %v43_v58 }
0x1558   :  { %6870 = vmatpush3.msra.mxu0 %v5126_v20  ;;  %v8062_v20 = vand.u32 4294901760, %v42_v36 }
0x1559   :  { %6872 = vmatmul.mubr.f32.vlgmr.msra.gmra.mxu0 %v5068_v1  ;;  %6885 = vmatprep.subr.mxu0 %v7044_v0  ;;  %v8067_v59 = vsub.f32 %v43_v58, %v8060_v16 }
0x155a   :  { %6893 = vmatprep.mubr.msk.f32.mxu0 %vm7045_vm1, %v7044_v0  ;;  %v8070_v2 = vsub.f32 %v42_v36, %v8062_v20  ;;  %6886 = vmatpush3.msra.mxu0 %v5514_v40 }
0x155b   :  { %6887 = vmatprep.subr.mxu0 %v7044_v0  ;;  %v5602_v61 = vand.u32 4294901760, %v8067_v59 }
0x155c   :  { %v5609_v23 = vand.u32 4294901760, %v8070_v2  ;;  %6888 = vmatpush3.msra.mxu0 %v8060_v16 }
0x155d   :  { %6889 = vmatprep.subr.mxu0 %v7044_v0  ;;  %v5603_v21 = vsub.f32 %v8067_v59, %v5602_v61 }
0x155e   :  { %v5610_v3 = vsub.f32 %v8070_v2, %v5609_v23  ;;  %6890 = vmatpush3.msra.mxu0 %v8062_v20 }
0x155f   :  { %6891 = vmatprep.subr.mxu0 %v7044_v0  ;;  %v5604_v28 = vand.u32 4294901760, %v5603_v21 }
0x1560   :  { %v5611_v46 = vand.u32 4294901760, %v5610_v3  ;;  %6892 = vmatpush3.msra.mxu0 %v5523_v11 }
0x1561   :  { %6899 = vmatpush3.msra.mxu1 %v5604_v28  ;;  %6907 = vmatprep.subr.mxu0 %v7044_v0 }
0x1562   :  { %6900 = vmatprep.subr.mxu1 %v7044_v0 }
0x1563   :  { %6901 = vmatpush3.msra.mxu1 %v5611_v46 }
0x1564   :  { %6902 = vmatprep.subr.mxu1 %v7044_v0 }
0x1565   :  { %6903 = vmatpush3.msra.mxu1 %v5618_v13 }
0x1566   :  { %6918 = vmatprep.subr.mxu1 %v7044_v0 }
0x15a4   :  { %v4965_v44 = vpop.permute.xlu0 %4964 }
0x15a5   :  { %v4967_v56 = vmul.f32 %v4965_v44, %v8052_v7 }
0x15a7   :  { %4969 = vrot.lane.b32.xlu0 %v4967_v56, %s7048_s13 }
0x15ff   :  { %v5165_v15 = vpop.f32.mrf.mxu1 }
0x1601   :  { %v6840_v47 = vpop.f32.mrf.mxu1 }
0x1607   :  { %v5322_v63 = vpop.f32.mrf.mxu1 }
0x1608   :  { %v5074_v50 = vpop.f32.mrf.mxu0 }
0x1609   :  { %v5166_v6 = vadd.f32 %v5165_v15, %v5074_v50  ;;  %v6862_v17 = vpop.f32.mrf.mxu1 }
0x160a   :  { %v6829_v18 = vpop.f32.mrf.mxu0 }
0x1610   :  { %v5245_v24 = vpop.f32.mrf.mxu0 }
0x1611   :  { %v5246_v25 = vadd.f32 %v5245_v24, %v5166_v6  ;;  %v5480_v26 = vpop.f32.mrf.mxu1 }
0x1612   :  { %v6851_v32 = vpop.f32.mrf.mxu0 }
0x1613   :  { %v6884_v34 = vpop.f32.mrf.mxu1  ;;  %v5323_v35 = vadd.f32 %v5322_v63, %v5246_v25 }
0x1619   :  { %v5405_v39 = vpop.f32.mrf.mxu0  ;;  %v4970_v42 = vpop.permute.xlu0 %4969 }
0x161a   :  { %v5406_v14 = vadd.f32 %v5405_v39, %v5323_v35  ;;  %v4972_v49 = vadd.f32 %v4970_v42, %v4962_v38 }
0x161b   :  { %v6873_v53 = vpop.f32.mrf.mxu0 }
0x161c   :  { %6995 = vtanh.f32 %v4972_v49  ;;  %v8058_v52 = vadd.f32 %v5480_v26, %v5406_v14 }
0x1629   :  { %v6996_v45 = vpop.eup %6995 }
0x162a   :  { %4975 = vrot.lane.b32.xlu0 %v6996_v45, %s7047_s0 }
0x169c   :  { %v4976_v54 = vpop.permute.xlu0 %4975 }
0x169d   :  { %v4978_v51 = vmul.f32 %v4976_v54, %v8052_v7 }
0x169f   :  { %5485 = vrot.lane.b32.xlu0 %v4978_v51, %s7048_s13 }
0x1711   :  { %v5486_v22 = vpop.permute.xlu0 %5485 }
0x1712   :  { %v5487_v55 = vsel %vm884_vm5, %v5486_v22, 0 }
0x1713   :  { %v5558_v62 = vand.u32 4294901760, %v5487_v55 }
0x1715   :  { %v5559_v33 = vsub.f32 %v5487_v55, %v5558_v62  ;;  %6905 = vmatmul.mubr.f32.vlgmr.msra.gmra.mxu1 %v5558_v62 }
0x1716   :  { %6919 = vmatpush3.msra.mxu1 %v5514_v40  ;;  %6926 = vmatprep.mubr.msk.f32.mxu1 %vm7045_vm1, %v7044_v0 }
0x1717   :  { %v5560_v10 = vand.u32 4294901760, %v5559_v33  ;;  %6920 = vmatprep.subr.mxu1 %v7044_v0 }
0x1718   :  { %6921 = vmatpush3.msra.mxu1 %v8060_v16 }
0x1719   :  { %v5561_v19 = vsub.f32 %v5559_v33, %v5560_v10  ;;  %6922 = vmatprep.subr.mxu1 %v7044_v0 }
0x171a   :  { %6923 = vmatpush3.msra.mxu1 %v8062_v20 }
0x171b   :  { %v5562_v27 = vand.u32 4294901760, %v5561_v19  ;;  %6924 = vmatprep.subr.mxu1 %v7044_v0 }
0x171c   :  { %6925 = vmatpush3.msra.mxu1 %v5523_v11 }
0x171d   :  { %6927 = vmatmul.mubr.f32.vlgmr.msra.gmra.mxu1 %v5560_v10  ;;  %6940 = vmatprep.subr.mxu1 %v7044_v0 }
0x171e   :  { %6894 = vmatmul.mubr.f32.vlgmr.msra.gmra.mxu0 %v5562_v27  ;;  %6941 = vmatpush3.msra.mxu1 %v5514_v40 }
0x171f   :  { %6908 = vmatpush3.msra.mxu0 %v8064_v37  ;;  %6942 = vmatprep.subr.mxu1 %v7044_v0 }
0x1720   :  { %6909 = vmatprep.subr.mxu0 %v7044_v0  ;;  %6943 = vmatpush3.msra.mxu1 %v8060_v16 }
0x1721   :  { %6910 = vmatpush3.msra.mxu0 %v8067_v59  ;;  %6944 = vmatprep.subr.mxu1 %v7044_v0 }
0x1722   :  { %6911 = vmatprep.subr.mxu0 %v7044_v0  ;;  %6945 = vmatpush3.msra.mxu1 %v8062_v20 }
0x1723   :  { %6912 = vmatpush3.msra.mxu0 %v8070_v2  ;;  %6946 = vmatprep.subr.mxu1 %v7044_v0 }
0x1724   :  { %6913 = vmatprep.subr.mxu0 %v7044_v0  ;;  %6915 = vmatprep.mubr.msk.f32.mxu0 %vm7045_vm1, %v7044_v0 }
0x1725   :  { %6914 = vmatpush3.msra.mxu0 %v5615_v43  ;;  %6947 = vmatpush3.msra.mxu1 %v5523_v11 }
0x1726   :  { %6948 = vmatprep.mubr.msk.f32.mxu1 %vm7045_vm1, %v7044_v0  ;;  %6916 = vmatmul.mubr.f32.vlgmr.msra.gmra.mxu0 %v5559_v33 }
0x1727   :  { %6929 = vmatprep.subr.mxu0 %v7044_v0  ;;  %6949 = vmatmul.mubr.f32.vlgmr.msra.gmra.mxu1 %v5558_v62 }
0x1728   :  { %6930 = vmatpush3.msra.mxu0 %v5595_v31  ;;  %6937 = vmatprep.mubr.msk.f32.mxu0 %vm7045_vm1, %v7044_v0 }
0x1729   :  { %6931 = vmatprep.subr.mxu0 %v7044_v0 }
0x172a   :  { %6932 = vmatpush3.msra.mxu0 %v5602_v61 }
0x172b   :  { %6933 = vmatprep.subr.mxu0 %v7044_v0 }
0x172c   :  { %6934 = vmatpush3.msra.mxu0 %v5609_v23 }
0x172d   :  { %6935 = vmatprep.subr.mxu0 %v7044_v0  ;;  %v49_v0 = vld [vmem:[#allocation2 + $0x170] ss:$0 sm:$0xff] }
0x172e   :  { %6936 = vmatpush3.msra.mxu0 %v5616_v4 }
0x172f   :  { %6938 = vmatmul.mubr.f32.vlgmr.msra.gmra.mxu0 %v5558_v62 }
0x17d5   :  { %v5655_v1 = vpop.f32.mrf.mxu1 }
0x17d7   :  { %v6906_v57 = vpop.f32.mrf.mxu1 }
0x17dd   :  { %v5812_v41 = vpop.f32.mrf.mxu1 }
0x17de   :  { %v5564_v12 = vpop.f32.mrf.mxu0 }
0x17df   :  { %v6928_v9 = vpop.f32.mrf.mxu1  ;;  %v5565_v7 = vadd.f32 %v5564_v12, %v8058_v52 }
0x17e0   :  { %v6895_v5 = vpop.f32.mrf.mxu0 }
0x17e1   :  { %v5656_v15 = vadd.f32 %v5655_v1, %v5565_v7 }
0x17e6   :  { %v5735_v44 = vpop.f32.mrf.mxu0 }
0x17e7   :  { %v5970_v56 = vpop.f32.mrf.mxu1  ;;  %v5736_v50 = vadd.f32 %v5735_v44, %v5656_v15 }
0x17e8   :  { %v6917_v47 = vpop.f32.mrf.mxu0 }
0x17e9   :  { %v6950_v63 = vpop.f32.mrf.mxu1  ;;  %v5813_v6 = vadd.f32 %v5812_v41, %v5736_v50 }
0x17ef   :  { %v5895_v17 = vpop.f32.mrf.mxu0 }
0x17f0   :  { %v5896_v18 = vadd.f32 %v5895_v17, %v5813_v6 }
0x17f1   :  { %v6939_v24 = vpop.f32.mrf.mxu0 }
0x17f2   :  { %v5971_v25 = vadd.f32 %v5970_v56, %v5896_v18 }
0x17f4   :  { %v5974_v26 = vadd.f32 %v5971_v25, %v49_v0 }
0x17f6   :  { %5975 = vst.msk [vmem:[#allocation5] sm:$0xff] %vm61_vm0, %v5974_v26 }
0x17f7   :  { %7028 = shalt.err (!%p7025_p9)
}
0x17f8   :  { %5985 = dma.vmem_to_hbm [thread:$0]  %s5983_s16, 128, %s8139_s1, [#allocation4]  }
0x17f9   :  { %7039 = dma.done.wait [#allocation4], 128  }
0x17fa   :  { %7040 = vsyncadd [#allocation4], 4294967168 }
0x17fb   :  { %5989 = vsyncpa [#allocation3], 1 }
0x17fc   :  { %5990 = vsyncpa [#allocation4], 1 }

</bundles_post_ra>
